<compile_context>
chip_gen: v6e
topology: v6e:2x2x1
jax: 0.10.0
libtpu: 0.0.40
codegen_flags: <defaults>
</compile_context>

<pallas_src>
import jax
import jax.numpy as jnp
from jax.experimental import pallas as pl
from jax.experimental.pallas import tpu as pltpu


# ---------------------------------------------------------------------------
# Fused Pallas kernel: conv+ReLU -> NCHW flatten -> Linear -> L2 normalize
# ---------------------------------------------------------------------------

def siamese_fused_kernel(patches_t_ref, w_conv_t_ref, b_conv_ref,
                         w_proj_ref, b_proj_ref, out_ref, conv_ref):
    """Single grid step; everything resident in VMEM.

    patches_t : [9*Cin, N*H*W]  im2col patches, transposed (k rows, pixels in lanes)
    w_conv_t  : [Cout, 9*Cin]   conv weight transposed; k ordered (kh, kw, cin)
    b_conv    : [Cout, 1]
    w_proj    : [Cout*H*W, E]   rows in PyTorch NCHW flatten order (c*H*W + h*W + w)
    b_proj    : [1, E]
    out       : [N, E]
    conv_ref  : VMEM scratch [Cout, N*H*W]  (lane-dense conv activations)
    """
    n_img, _ = out_ref.shape
    cout, total = conv_ref.shape
    hw = total // n_img

    # (1) Conv 3x3 / pad=1 + bias + ReLU as a single MXU matmul; kept on-chip.
    conv = jnp.dot(w_conv_t_ref[...], patches_t_ref[...],
                   preferred_element_type=jnp.float32)            # [Cout, N*HW]
    conv_ref[...] = jnp.maximum(conv + b_conv_ref[...], 0.0)

    # (2) flatten(NCHW) + dropout(eval=identity) + Linear, decomposed over Cout
    #     so no in-kernel reshape/transpose is needed:
    #       emb[n] = b + sum_c conv[c, n*HW:(n+1)*HW] @ w_proj[c*HW:(c+1)*HW, :]
    # TODO(synk): training-mode stochastic dropout (pltpu.prng_*) not emitted;
    # eval-mode (inference) semantics are implemented.
    bias = b_proj_ref[...]                                        # [1, E]
    embs = [bias for _ in range(n_img)]
    for c in range(cout):
        rhs = w_proj_ref[c * hw:(c + 1) * hw, :]                  # [HW, E]
        for n in range(n_img):
            lhs = conv_ref[c:c + 1, n * hw:(n + 1) * hw]          # [1, HW]
            embs[n] = embs[n] + jnp.dot(lhs, rhs,
                                        preferred_element_type=jnp.float32)

    # (3) F.normalize(p=2, dim=1): x / max(||x||, eps), eps = 1e-12.
    #     rsqrt keeps the transcendental on the EUP; clamping ssq at eps**2 is
    #     mathematically identical to clamping the norm at eps (sqrt monotone).
    for n in range(n_img):
        emb = embs[n]
        ssq = jnp.sum(emb * emb, axis=1, keepdims=True)           # [1, 1]
        inv = jax.lax.rsqrt(jnp.maximum(ssq, 1e-24))
        out_ref[n:n + 1, :] = emb * inv


# ---------------------------------------------------------------------------
# Glue (plain JAX): im2col (transposed), pallas_call wrapper, reference
# ---------------------------------------------------------------------------

def _full_spec(shape):
    # single grid step, whole-array block resident in VMEM
    return pl.BlockSpec(shape, lambda i: (0,) * len(shape))


def _im2col_t(x_nchw):
    """3x3 / stride 1 / pad 1 patches, transposed: [9*Cin, N*H*W].

    Row order k = (kh*3 + kw)*Cin + ci; column order p = n*H*W + h*W + w.
    (Built in plain JAX; negligible at 16x16.  TODO(synk): for large H,W fold the
    9 shifted windows into in-kernel accumulation to avoid the 9x patch expansion.)
    """
    n, c, h, w = x_nchw.shape
    xp = jnp.pad(x_nchw, ((0, 0), (0, 0), (1, 1), (1, 1)))
    rows = []
    for kh in range(3):
        for kw in range(3):
            sl = xp[:, :, kh:kh + h, kw:kw + w]                   # [N, Cin, H, W]
            rows.append(jnp.transpose(sl, (1, 0, 2, 3)).reshape(c, n * h * w))
    return jnp.concatenate(rows, axis=0)                          # [9*Cin, N*H*W]


def siamese_forward(x_nchw, w_conv, b_conv, w_proj, b_proj):
    """SiameseNetwork.forward (eval mode).  x is PyTorch-style NCHW float32.

    w_conv : [9*Cin, Cout]  rows ordered (kh, kw, cin)
    b_conv : [Cout]
    w_proj : [Cout*H*W, E]  rows in NCHW flatten order (== torch projection.weight.T)
    b_proj : [E]
    """
    n, cin, h, w = x_nchw.shape
    cout = w_conv.shape[1]
    emb_dim = w_proj.shape[1]
    hw = h * w

    patches_t = _im2col_t(x_nchw)                 # [9*Cin, N*HW]
    w_conv_t = jnp.transpose(w_conv)              # [Cout, 9*Cin]
    b_conv_c = b_conv.reshape(cout, 1)
    b_proj_r = b_proj.reshape(1, emb_dim)

    return pl.pallas_call(
        siamese_fused_kernel,
        out_shape=jax.ShapeDtypeStruct((n, emb_dim), jnp.float32),
        grid=(1,),
        in_specs=[_full_spec(patches_t.shape),
                  _full_spec(w_conv_t.shape),
                  _full_spec(b_conv_c.shape),
                  _full_spec(w_proj.shape),
                  _full_spec(b_proj_r.shape)],
        out_specs=_full_spec((n, emb_dim)),
        scratch_shapes=[pltpu.VMEM((cout, n * hw), jnp.float32)],
        # Single grid step at these shapes; once N*H*W is large enough to tile,
        # mark that grid axis "parallel" so v7x's two TensorCores split it.
        compiler_params=pltpu.CompilerParams(
            dimension_semantics=("arbitrary",)),
    )(patches_t, w_conv_t, b_conv_c, w_proj, b_proj_r)


def reference_forward(x_nchw, w_conv, b_conv, w_proj, b_proj):
    """Pure-JAX reference matching the PyTorch module (eval mode)."""
    n, cin, h, w = x_nchw.shape
    cout = w_conv.shape[1]
    k_oihw = jnp.transpose(w_conv.reshape(3, 3, cin, cout), (3, 2, 0, 1))
    conv = jax.lax.conv_general_dilated(
        x_nchw, k_oihw, window_strides=(1, 1), padding=((1, 1), (1, 1)),
        dimension_numbers=("NCHW", "OIHW", "NCHW"))
    conv = jnp.maximum(conv + b_conv.reshape(1, cout, 1, 1), 0.0)
    feat = conv.reshape(n, -1)                    # .view(B, -1): NCHW flatten
    emb = feat @ w_proj + b_proj.reshape(1, -1)
    nrm = jnp.maximum(jnp.linalg.norm(emb, axis=1, keepdims=True), 1e-12)
    return emb / nrm


# ---------------------------------------------------------------------------
# Driver
# ---------------------------------------------------------------------------

if __name__ == "__main__":
    key = jax.random.PRNGKey(0)
    k1, k2, k3, k4, k5 = jax.random.split(key, 5)

    N, CIN, H, W = 2, 3, 16, 16
    COUT, EMB_DIM = 8, 32
    FEATURE_DIM = COUT * H * W                    # flattened conv output

    x = jax.random.normal(k1, (N, CIN, H, W), jnp.float32)

    # deterministic synthetic parameters
    w_conv = 0.1 * jax.random.normal(k2, (3 * 3 * CIN, COUT), jnp.float32)
    b_conv = 0.1 * jax.random.normal(k3, (COUT,), jnp.float32)
    w_proj = 0.02 * jax.random.normal(k4, (FEATURE_DIM, EMB_DIM), jnp.float32)
    b_proj = 0.02 * jax.random.normal(k5, (EMB_DIM,), jnp.float32)

    out = jax.block_until_ready(siamese_forward(x, w_conv, b_conv, w_proj, b_proj))

    assert out.shape == (N, EMB_DIM)
    # embeddings must be unit-norm along dim=1
    norms = jnp.linalg.norm(out, axis=1)
    assert bool(jnp.all(jnp.abs(norms - 1.0) < 1e-4))

    # structural correctness vs. an independent pure-JAX reference
    ref = jax.block_until_ready(reference_forward(x, w_conv, b_conv, w_proj, b_proj))
    assert bool(jnp.all(jnp.abs(out - ref) < 2e-2))

    print("KERNEL_OK")
</pallas_src>

<mosaic_0001>
module attributes {stable_mosaic.version = 11 : i64} {
  func.func @siamese_fused_kernel(%arg0: i32, %arg1: memref<27x512xf32, #tpu.memory_space<vmem>>, %arg2: memref<8x27xf32, #tpu.memory_space<vmem>>, %arg3: memref<8x1xf32, #tpu.memory_space<vmem>>, %arg4: memref<2048x32xf32, #tpu.memory_space<vmem>>, %arg5: memref<1x32xf32, #tpu.memory_space<vmem>>, %arg6: memref<2x32xf32, #tpu.memory_space<vmem>>, %arg7: memref<8x512xf32, #tpu.memory_space<vmem>>) attributes {dimension_semantics = [#tpu.dimension_semantics<arbitrary>], iteration_bounds = array<i64: 1>, scalar_prefetch = 0 : i64, scratch_operands = 1 : i64, tpu.core_type = #tpu.core_type<tc>, window_params = [{pipeline_mode = #tpu.pipeline_mode<synchronous>, transform_indices = @transform_0, window_bounds = array<i64: 27, 512>}, {pipeline_mode = #tpu.pipeline_mode<synchronous>, transform_indices = @transform_1, window_bounds = array<i64: 8, 27>}, {pipeline_mode = #tpu.pipeline_mode<synchronous>, transform_indices = @transform_2, window_bounds = array<i64: 8, 1>}, {pipeline_mode = #tpu.pipeline_mode<synchronous>, transform_indices = @transform_3, window_bounds = array<i64: 2048, 32>}, {pipeline_mode = #tpu.pipeline_mode<synchronous>, transform_indices = @transform_4, window_bounds = array<i64: 1, 32>}, {pipeline_mode = #tpu.pipeline_mode<synchronous>, transform_indices = @transform_5, window_bounds = array<i64: 2, 32>}]} {
    %c0 = arith.constant 0 : index
    %c0_0 = arith.constant 0 : index
    %0 = vector.load %arg2[%c0, %c0_0] : memref<8x27xf32, #tpu.memory_space<vmem>>, vector<8x27xf32>
    %c0_1 = arith.constant 0 : index
    %c0_2 = arith.constant 0 : index
    %1 = vector.load %arg1[%c0_1, %c0_2] : memref<27x512xf32, #tpu.memory_space<vmem>>, vector<27x512xf32>
    %cst = arith.constant dense<0.000000e+00> : vector<8x512xf32>
    %2 = tpu.matmul %0, %1, %cst {dimension_numbers = #tpu.dot_dimension_numbers<[1], [0], [0], [1], [0, 0, 1, 1], [], []>} : vector<8x27xf32>, vector<27x512xf32>, vector<8x512xf32> -> vector<8x512xf32>
    %c0_3 = arith.constant 0 : index
    %c0_4 = arith.constant 0 : index
    %3 = vector.load %arg3[%c0_3, %c0_4] : memref<8x1xf32, #tpu.memory_space<vmem>>, vector<8x1xf32>
    %4 = vector.broadcast %3 : vector<8x1xf32> to vector<8x512xf32>
    %5 = arith.addf %2, %4 : vector<8x512xf32>
    %cst_5 = arith.constant 0.000000e+00 : f32
    %6 = vector.broadcast %cst_5 : f32 to vector<8x512xf32>
    %7 = arith.maximumf %5, %6 : vector<8x512xf32>
    %c0_6 = arith.constant 0 : index
    %c0_7 = arith.constant 0 : index
    %8 = vector.load %arg7[%c0_6, %c0_7] : memref<8x512xf32, #tpu.memory_space<vmem>>, vector<8x512xf32>
    tpu.vector_store %arg7[%c0_6, %c0_7], %7 {strides = array<i32>} : memref<8x512xf32, #tpu.memory_space<vmem>>, vector<8x512xf32>,
    %c0_8 = arith.constant 0 : index
    %c0_9 = arith.constant 0 : index
    %9 = vector.load %arg5[%c0_8, %c0_9] : memref<1x32xf32, #tpu.memory_space<vmem>>, vector<1x32xf32>
    %c0_10 = arith.constant 0 : index
    %c0_11 = arith.constant 0 : index
    %10 = vector.load %arg4[%c0_10, %c0_11] : memref<2048x32xf32, #tpu.memory_space<vmem>>, vector<256x32xf32>
    %c0_12 = arith.constant 0 : index
    %c0_13 = arith.constant 0 : index
    %11 = vector.load %arg7[%c0_12, %c0_13] : memref<8x512xf32, #tpu.memory_space<vmem>>, vector<1x256xf32>
    %cst_14 = arith.constant dense<0.000000e+00> : vector<1x32xf32>
    %12 = tpu.matmul %11, %10, %cst_14 {dimension_numbers = #tpu.dot_dimension_numbers<[1], [0], [0], [1], [0, 0, 1, 1], [], []>} : vector<1x256xf32>, vector<256x32xf32>, vector<1x32xf32> -> vector<1x32xf32>
    %13 = arith.addf %9, %12 : vector<1x32xf32>
    %c0_15 = arith.constant 0 : index
    %c256 = arith.constant 256 : index
    %14 = vector.load %arg7[%c0_15, %c256] : memref<8x512xf32, #tpu.memory_space<vmem>>, vector<1x256xf32>
    %cst_16 = arith.constant dense<0.000000e+00> : vector<1x32xf32>
    %15 = tpu.matmul %14, %10, %cst_16 {dimension_numbers = #tpu.dot_dimension_numbers<[1], [0], [0], [1], [0, 0, 1, 1], [], []>} : vector<1x256xf32>, vector<256x32xf32>, vector<1x32xf32> -> vector<1x32xf32>
    %16 = arith.addf %9, %15 : vector<1x32xf32>
    %c256_17 = arith.constant 256 : index
    %c0_18 = arith.constant 0 : index
    %17 = vector.load %arg4[%c256_17, %c0_18] : memref<2048x32xf32, #tpu.memory_space<vmem>>, vector<256x32xf32>
    %c1 = arith.constant 1 : index
    %c0_19 = arith.constant 0 : index
    %18 = vector.load %arg7[%c1, %c0_19] : memref<8x512xf32, #tpu.memory_space<vmem>>, vector<1x256xf32>
    %cst_20 = arith.constant dense<0.000000e+00> : vector<1x32xf32>
    %19 = tpu.matmul %18, %17, %cst_20 {dimension_numbers = #tpu.dot_dimension_numbers<[1], [0], [0], [1], [0, 0, 1, 1], [], []>} : vector<1x256xf32>, vector<256x32xf32>, vector<1x32xf32> -> vector<1x32xf32>
    %20 = arith.addf %13, %19 : vector<1x32xf32>
    %c1_21 = arith.constant 1 : index
    %c256_22 = arith.constant 256 : index
    %21 = vector.load %arg7[%c1_21, %c256_22] : memref<8x512xf32, #tpu.memory_space<vmem>>, vector<1x256xf32>
    %cst_23 = arith.constant dense<0.000000e+00> : vector<1x32xf32>
    %22 = tpu.matmul %21, %17, %cst_23 {dimension_numbers = #tpu.dot_dimension_numbers<[1], [0], [0], [1], [0, 0, 1, 1], [], []>} : vector<1x256xf32>, vector<256x32xf32>, vector<1x32xf32> -> vector<1x32xf32>
    %23 = arith.addf %16, %22 : vector<1x32xf32>
    %c512 = arith.constant 512 : index
    %c0_24 = arith.constant 0 : index
    %24 = vector.load %arg4[%c512, %c0_24] : memref<2048x32xf32, #tpu.memory_space<vmem>>, vector<256x32xf32>
    %c2 = arith.constant 2 : index
    %c0_25 = arith.constant 0 : index
    %25 = vector.load %arg7[%c2, %c0_25] : memref<8x512xf32, #tpu.memory_space<vmem>>, vector<1x256xf32>
    %cst_26 = arith.constant dense<0.000000e+00> : vector<1x32xf32>
    %26 = tpu.matmul %25, %24, %cst_26 {dimension_numbers = #tpu.dot_dimension_numbers<[1], [0], [0], [1], [0, 0, 1, 1], [], []>} : vector<1x256xf32>, vector<256x32xf32>, vector<1x32xf32> -> vector<1x32xf32>
    %27 = arith.addf %20, %26 : vector<1x32xf32>
    %c2_27 = arith.constant 2 : index
    %c256_28 = arith.constant 256 : index
    %28 = vector.load %arg7[%c2_27, %c256_28] : memref<8x512xf32, #tpu.memory_space<vmem>>, vector<1x256xf32>
    %cst_29 = arith.constant dense<0.000000e+00> : vector<1x32xf32>
    %29 = tpu.matmul %28, %24, %cst_29 {dimension_numbers = #tpu.dot_dimension_numbers<[1], [0], [0], [1], [0, 0, 1, 1], [], []>} : vector<1x256xf32>, vector<256x32xf32>, vector<1x32xf32> -> vector<1x32xf32>
    %30 = arith.addf %23, %29 : vector<1x32xf32>
    %c768 = arith.constant 768 : index
    %c0_30 = arith.constant 0 : index
    %31 = vector.load %arg4[%c768, %c0_30] : memref<2048x32xf32, #tpu.memory_space<vmem>>, vector<256x32xf32>
    %c3 = arith.constant 3 : index
    %c0_31 = arith.constant 0 : index
    %32 = vector.load %arg7[%c3, %c0_31] : memref<8x512xf32, #tpu.memory_space<vmem>>, vector<1x256xf32>
    %cst_32 = arith.constant dense<0.000000e+00> : vector<1x32xf32>
    %33 = tpu.matmul %32, %31, %cst_32 {dimension_numbers = #tpu.dot_dimension_numbers<[1], [0], [0], [1], [0, 0, 1, 1], [], []>} : vector<1x256xf32>, vector<256x32xf32>, vector<1x32xf32> -> vector<1x32xf32>
    %34 = arith.addf %27, %33 : vector<1x32xf32>
    %c3_33 = arith.constant 3 : index
    %c256_34 = arith.constant 256 : index
    %35 = vector.load %arg7[%c3_33, %c256_34] : memref<8x512xf32, #tpu.memory_space<vmem>>, vector<1x256xf32>
    %cst_35 = arith.constant dense<0.000000e+00> : vector<1x32xf32>
    %36 = tpu.matmul %35, %31, %cst_35 {dimension_numbers = #tpu.dot_dimension_numbers<[1], [0], [0], [1], [0, 0, 1, 1], [], []>} : vector<1x256xf32>, vector<256x32xf32>, vector<1x32xf32> -> vector<1x32xf32>
    %37 = arith.addf %30, %36 : vector<1x32xf32>
    %c1024 = arith.constant 1024 : index
    %c0_36 = arith.constant 0 : index
    %38 = vector.load %arg4[%c1024, %c0_36] : memref<2048x32xf32, #tpu.memory_space<vmem>>, vector<256x32xf32>
    %c4 = arith.constant 4 : index
    %c0_37 = arith.constant 0 : index
    %39 = vector.load %arg7[%c4, %c0_37] : memref<8x512xf32, #tpu.memory_space<vmem>>, vector<1x256xf32>
    %cst_38 = arith.constant dense<0.000000e+00> : vector<1x32xf32>
    %40 = tpu.matmul %39, %38, %cst_38 {dimension_numbers = #tpu.dot_dimension_numbers<[1], [0], [0], [1], [0, 0, 1, 1], [], []>} : vector<1x256xf32>, vector<256x32xf32>, vector<1x32xf32> -> vector<1x32xf32>
    %41 = arith.addf %34, %40 : vector<1x32xf32>
    %c4_39 = arith.constant 4 : index
    %c256_40 = arith.constant 256 : index
    %42 = vector.load %arg7[%c4_39, %c256_40] : memref<8x512xf32, #tpu.memory_space<vmem>>, vector<1x256xf32>
    %cst_41 = arith.constant dense<0.000000e+00> : vector<1x32xf32>
    %43 = tpu.matmul %42, %38, %cst_41 {dimension_numbers = #tpu.dot_dimension_numbers<[1], [0], [0], [1], [0, 0, 1, 1], [], []>} : vector<1x256xf32>, vector<256x32xf32>, vector<1x32xf32> -> vector<1x32xf32>
    %44 = arith.addf %37, %43 : vector<1x32xf32>
    %c1280 = arith.constant 1280 : index
    %c0_42 = arith.constant 0 : index
    %45 = vector.load %arg4[%c1280, %c0_42] : memref<2048x32xf32, #tpu.memory_space<vmem>>, vector<256x32xf32>
    %c5 = arith.constant 5 : index
    %c0_43 = arith.constant 0 : index
    %46 = vector.load %arg7[%c5, %c0_43] : memref<8x512xf32, #tpu.memory_space<vmem>>, vector<1x256xf32>
    %cst_44 = arith.constant dense<0.000000e+00> : vector<1x32xf32>
    %47 = tpu.matmul %46, %45, %cst_44 {dimension_numbers = #tpu.dot_dimension_numbers<[1], [0], [0], [1], [0, 0, 1, 1], [], []>} : vector<1x256xf32>, vector<256x32xf32>, vector<1x32xf32> -> vector<1x32xf32>
    %48 = arith.addf %41, %47 : vector<1x32xf32>
    %c5_45 = arith.constant 5 : index
    %c256_46 = arith.constant 256 : index
    %49 = vector.load %arg7[%c5_45, %c256_46] : memref<8x512xf32, #tpu.memory_space<vmem>>, vector<1x256xf32>
    %cst_47 = arith.constant dense<0.000000e+00> : vector<1x32xf32>
    %50 = tpu.matmul %49, %45, %cst_47 {dimension_numbers = #tpu.dot_dimension_numbers<[1], [0], [0], [1], [0, 0, 1, 1], [], []>} : vector<1x256xf32>, vector<256x32xf32>, vector<1x32xf32> -> vector<1x32xf32>
    %51 = arith.addf %44, %50 : vector<1x32xf32>
    %c1536 = arith.constant 1536 : index
    %c0_48 = arith.constant 0 : index
    %52 = vector.load %arg4[%c1536, %c0_48] : memref<2048x32xf32, #tpu.memory_space<vmem>>, vector<256x32xf32>
    %c6 = arith.constant 6 : index
    %c0_49 = arith.constant 0 : index
    %53 = vector.load %arg7[%c6, %c0_49] : memref<8x512xf32, #tpu.memory_space<vmem>>, vector<1x256xf32>
    %cst_50 = arith.constant dense<0.000000e+00> : vector<1x32xf32>
    %54 = tpu.matmul %53, %52, %cst_50 {dimension_numbers = #tpu.dot_dimension_numbers<[1], [0], [0], [1], [0, 0, 1, 1], [], []>} : vector<1x256xf32>, vector<256x32xf32>, vector<1x32xf32> -> vector<1x32xf32>
    %55 = arith.addf %48, %54 : vector<1x32xf32>
    %c6_51 = arith.constant 6 : index
    %c256_52 = arith.constant 256 : index
    %56 = vector.load %arg7[%c6_51, %c256_52] : memref<8x512xf32, #tpu.memory_space<vmem>>, vector<1x256xf32>
    %cst_53 = arith.constant dense<0.000000e+00> : vector<1x32xf32>
    %57 = tpu.matmul %56, %52, %cst_53 {dimension_numbers = #tpu.dot_dimension_numbers<[1], [0], [0], [1], [0, 0, 1, 1], [], []>} : vector<1x256xf32>, vector<256x32xf32>, vector<1x32xf32> -> vector<1x32xf32>
    %58 = arith.addf %51, %57 : vector<1x32xf32>
    %c1792 = arith.constant 1792 : index
    %c0_54 = arith.constant 0 : index
    %59 = vector.load %arg4[%c1792, %c0_54] : memref<2048x32xf32, #tpu.memory_space<vmem>>, vector<256x32xf32>
    %c7 = arith.constant 7 : index
    %c0_55 = arith.constant 0 : index
    %60 = vector.load %arg7[%c7, %c0_55] : memref<8x512xf32, #tpu.memory_space<vmem>>, vector<1x256xf32>
    %cst_56 = arith.constant dense<0.000000e+00> : vector<1x32xf32>
    %61 = tpu.matmul %60, %59, %cst_56 {dimension_numbers = #tpu.dot_dimension_numbers<[1], [0], [0], [1], [0, 0, 1, 1], [], []>} : vector<1x256xf32>, vector<256x32xf32>, vector<1x32xf32> -> vector<1x32xf32>
    %62 = arith.addf %55, %61 : vector<1x32xf32>
    %c7_57 = arith.constant 7 : index
    %c256_58 = arith.constant 256 : index
    %63 = vector.load %arg7[%c7_57, %c256_58] : memref<8x512xf32, #tpu.memory_space<vmem>>, vector<1x256xf32>
    %cst_59 = arith.constant dense<0.000000e+00> : vector<1x32xf32>
    %64 = tpu.matmul %63, %59, %cst_59 {dimension_numbers = #tpu.dot_dimension_numbers<[1], [0], [0], [1], [0, 0, 1, 1], [], []>} : vector<1x256xf32>, vector<256x32xf32>, vector<1x32xf32> -> vector<1x32xf32>
    %65 = arith.addf %58, %64 : vector<1x32xf32>
    %66 = arith.mulf %62, %62 : vector<1x32xf32>
    %cst_60 = arith.constant dense<0.000000e+00> : vector<1xf32>
    %67 = vector.multi_reduction <add>, %66, %cst_60 [1] : vector<1x32xf32> to vector<1xf32>
    %68 = vector.shape_cast %67 : vector<1xf32> to vector<1x1xf32>
    %cst_61 = arith.constant 1.000000e-24 : f32
    %69 = vector.broadcast %cst_61 : f32 to vector<1x1xf32>
    %70 = arith.maximumf %68, %69 : vector<1x1xf32>
    %71 = math.rsqrt %70 : vector<1x1xf32>
    %72 = vector.broadcast %71 : vector<1x1xf32> to vector<1x32xf32>
    %73 = arith.mulf %62, %72 : vector<1x32xf32>
    %c0_62 = arith.constant 0 : index
    %c0_63 = arith.constant 0 : index
    %74 = vector.load %arg6[%c0_62, %c0_63] : memref<2x32xf32, #tpu.memory_space<vmem>>, vector<1x32xf32>
    tpu.vector_store %arg6[%c0_62, %c0_63], %73 {strides = array<i32>} : memref<2x32xf32, #tpu.memory_space<vmem>>, vector<1x32xf32>,
    %75 = arith.mulf %65, %65 : vector<1x32xf32>
    %cst_64 = arith.constant dense<0.000000e+00> : vector<1xf32>
    %76 = vector.multi_reduction <add>, %75, %cst_64 [1] : vector<1x32xf32> to vector<1xf32>
    %77 = vector.shape_cast %76 : vector<1xf32> to vector<1x1xf32>
    %cst_65 = arith.constant 1.000000e-24 : f32
    %78 = vector.broadcast %cst_65 : f32 to vector<1x1xf32>
    %79 = arith.maximumf %77, %78 : vector<1x1xf32>
    %80 = math.rsqrt %79 : vector<1x1xf32>
    %81 = vector.broadcast %80 : vector<1x1xf32> to vector<1x32xf32>
    %82 = arith.mulf %65, %81 : vector<1x32xf32>
    %c1_66 = arith.constant 1 : index
    %c0_67 = arith.constant 0 : index
    %83 = vector.load %arg6[%c1_66, %c0_67] : memref<2x32xf32, #tpu.memory_space<vmem>>, vector<1x32xf32>
    tpu.vector_store %arg6[%c1_66, %c0_67], %82 {strides = array<i32>} : memref<2x32xf32, #tpu.memory_space<vmem>>, vector<1x32xf32>,
    return
  }
  func.func @transform_0(%arg0: i32) -> (i32, i32) {
    %c0_i32 = arith.constant 0 : i32
    %c0_i32_0 = arith.constant 0 : i32
    %c0_i32_1 = arith.constant 0 : i32
    return %c0_i32, %c0_i32_0 : i32, i32
  }
  func.func @transform_1(%arg0: i32) -> (i32, i32) {
    %c0_i32 = arith.constant 0 : i32
    %c0_i32_0 = arith.constant 0 : i32
    %c0_i32_1 = arith.constant 0 : i32
    return %c0_i32, %c0_i32_0 : i32, i32
  }
  func.func @transform_2(%arg0: i32) -> (i32, i32) {
    %c0_i32 = arith.constant 0 : i32
    %c0_i32_0 = arith.constant 0 : i32
    %c0_i32_1 = arith.constant 0 : i32
    return %c0_i32, %c0_i32_0 : i32, i32
  }
  func.func @transform_3(%arg0: i32) -> (i32, i32) {
    %c0_i32 = arith.constant 0 : i32
    %c0_i32_0 = arith.constant 0 : i32
    %c0_i32_1 = arith.constant 0 : i32
    return %c0_i32, %c0_i32_0 : i32, i32
  }
  func.func @transform_4(%arg0: i32) -> (i32, i32) {
    %c0_i32 = arith.constant 0 : i32
    %c0_i32_0 = arith.constant 0 : i32
    %c0_i32_1 = arith.constant 0 : i32
    return %c0_i32, %c0_i32_0 : i32, i32
  }
  func.func @transform_5(%arg0: i32) -> (i32, i32) {
    %c0_i32 = arith.constant 0 : i32
    %c0_i32_0 = arith.constant 0 : i32
    %c0_i32_1 = arith.constant 0 : i32
    return %c0_i32, %c0_i32_0 : i32, i32
  }
}

</mosaic_0001>

<bundles_post_ra>
// kernel: tpu_custom_call.1
= control target key start
LH: loop header
LB: loop body
LE: loop exit
PB: predicated region body
PF: predicated region fallthrough
CT: control target
= control target key end

     0   :  { %vm48_vm0 = vcmask 1042432   ;;  %vm44_vm1 = vcmask 220160   ;;  %v2438_v17 = vmov 0.0   ;;  %v2439_v21 = vmov 0   ;;  %s3395_s0 = inlined_call_operand.vmem [shape: f32[27,512], index: 0, kind: input, shape index: {}]   ;;  %s3396_s1 = inlined_call_operand.vmem [shape: f32[8,27], index: 1, kind: input, shape index: {}]   ;;  %s3397_s2 = inlined_call_operand.vmem [shape: f32[8,1], index: 2, kind: input, shape index: {}]   ;;  %s3398_s3 = inlined_call_operand.vmem [shape: f32[2048,32], index: 3, kind: input, shape index: {}]   ;;  %s3399_s4 = inlined_call_operand.vmem [shape: f32[1,32], index: 4, kind: input, shape index: {}]   ;;  %s3400_s5 = inlined_call_operand.hbm [shape: f32[2,32], index: 5, kind: output, shape index: {}]  }
   0x1   :  { %v35_v0 = vld [vmem:[%s3395_s0 + $0x68] sm:$0x7]  ;;  %v37_v1 = vld [vmem:[%s3395_s0 + $0x78] sm:$0x7]  ;;  %v34_v3 = vld [vmem:[%s3395_s0 + $0x60] sm:$0x7]  ;;  %125 = vmatprep.mubr.f32.mxu0 %v2438_v17  ;;  %196 = vmatprep.mubr.f32.mxu1 %v2438_v17 }
   0x2   :  { %v31_v2 = vld [vmem:[%s3395_s0 + $0x48] sm:$0xff]  ;;  %1842 = vmatprep.subr.msk.mxu0 %vm48_vm0, %v35_v0  ;;  %1845 = vmatprep.subr.msk.mxu1 %vm48_vm0, %v37_v1  ;;  %v36_v4 = vld [vmem:[%s3395_s0 + $0x70] sm:$0x7]  ;;  %v33_v5 = vld [vmem:[%s3395_s0 + $0x58] sm:$0xff] }
   0x3   :  { %1843 = vmatpush1.msk.msra.mxu0 %vm48_vm0, %v34_v3  ;;  %1846 = vmatpush1.msk.msra.mxu1 %vm48_vm0, %v36_v4  ;;  %v30_v6 = vld [vmem:[%s3395_s0 + $0x40] sm:$0xff]  ;;  %v32_v7 = vld [vmem:[%s3395_s0 + $0x50] sm:$0xff]  ;;  %v27_v8 = vld [vmem:[%s3395_s0 + $0x28] sm:$0xff] }
   0x4   :  { %87 = vmatprep.subr.mxu0 %v31_v2  ;;  %158 = vmatprep.subr.mxu1 %v33_v5  ;;  %v29_v9 = vld [vmem:[%s3395_s0 + $0x38] sm:$0xff]  ;;  %v26_v10 = vld [vmem:[%s3395_s0 + $0x20] sm:$0xff]  ;;  %v28_v11 = vld [vmem:[%s3395_s0 + $0x30] sm:$0xff] }
   0x5   :  { %88 = vmatpush1.msra.mxu0 %v30_v6  ;;  %159 = vmatpush1.msra.mxu1 %v32_v7  ;;  %v23_v12 = vld [vmem:[%s3395_s0 + $0x8] sm:$0xff]  ;;  %v25_v13 = vld [vmem:[%s3395_s0 + $0x18] sm:$0xff]  ;;  %v22_v14 = vld [vmem:[%s3395_s0] sm:$0xff] }
   0x6   :  { %89 = vmatprep.subr.mxu0 %v27_v8  ;;  %160 = vmatprep.subr.mxu1 %v29_v9  ;;  %v24_v15 = vld [vmem:[%s3395_s0 + $0x10] sm:$0xff]  ;;  %v21_v16 = vld [vmem:[%s3396_s1] sm:$0xff]  ;;  %v243_v18 = vld [vmem:[%s3398_s3 + $0xf8] sm:$0xff] }
   0x7   :  { %90 = vmatpush1.msra.mxu0 %v26_v10  ;;  %161 = vmatpush1.msra.mxu1 %v28_v11  ;;  %v38_v19 = vld [vmem:[%s3397_s2] sm:$0xff]  ;;  %v227_v20 = vld [vmem:[%s3398_s3 + $0x78] sm:$0xff]  ;;  %v242_v22 = vld [vmem:[%s3398_s3 + $0xf0] sm:$0xff] }
   0x8   :  { %91 = vmatprep.subr.mxu0 %v23_v12  ;;  %162 = vmatprep.subr.mxu1 %v25_v13 }
   0x9   :  { %92 = vmatpush1.msra.mxu0 %v22_v14  ;;  %163 = vmatpush1.msra.mxu1 %v24_v15 }
   0xa   :  { %1844 = vmatmul.mubr.msk.f32.vlgmr.msra.gmra.mxu0 %vm44_vm1, %v21_v16  ;;  %1847 = vmatmul.mubr.msk.f32.vlgmr.msra.gmra.mxu1 %vm44_vm1, %v21_v16 }
   0xb   :  { %2411 = vset.pattern.permute.xlu0 %v2439_v21  ;;  %1848 = vmatprep.subr.mxu0 %v243_v18 }
   0xc   :  { %10 = vsyncpa [#allocation4], 0  ;;  %41 = vperm.xlu0 %2411, %v38_v19   ;;  %1883 = vmatprep.subr.mxu1 %v243_v18  ;;  %v226_v23 = vld [vmem:[%s3398_s3 + $0x70] sm:$0xff]  ;;  %v241_v24 = vld [vmem:[%s3398_s3 + $0xe8] sm:$0xff]  ;;  %v246_v60 = vlaneseq  ;;  %vm1812_vm2 = vcmask 253952  }
   0xd   :  { %1849 = vmatpush3.msra.mxu0 %v227_v20  ;;  %1884 = vmatpush3.msra.mxu1 %v227_v20  ;;  %v225_v25 = vld [vmem:[%s3398_s3 + $0x68] sm:$0xff]  ;;  %v240_v26 = vld [vmem:[%s3398_s3 + $0xe0] sm:$0xff]  ;;  %v239_v28 = vld [vmem:[%s3398_s3 + $0xd8] sm:$0xff] }
   0xe   :  { %1850 = vmatprep.subr.mxu0 %v242_v22  ;;  %1885 = vmatprep.subr.mxu1 %v242_v22  ;;  %v224_v27 = vld [vmem:[%s3398_s3 + $0x60] sm:$0xff]  ;;  %v223_v29 = vld [vmem:[%s3398_s3 + $0x58] sm:$0xff]  ;;  %v238_v30 = vld [vmem:[%s3398_s3 + $0xd0] sm:$0xff]  ;;  %v247_v3 = vshrl.u32 %v246_v60, 7 }
   0xf   :  { %1851 = vmatpush3.msra.mxu0 %v226_v23  ;;  %1886 = vmatpush3.msra.mxu1 %v226_v23  ;;  %v222_v31 = vld [vmem:[%s3398_s3 + $0x50] sm:$0xff]  ;;  %v237_v32 = vld [vmem:[%s3398_s3 + $0xc8] sm:$0xff]  ;;  %v236_v34 = vld [vmem:[%s3398_s3 + $0xc0] sm:$0xff] }
  0x10   :  { %1852 = vmatprep.subr.mxu0 %v241_v24  ;;  %1887 = vmatprep.subr.mxu1 %v241_v24  ;;  %v221_v33 = vld [vmem:[%s3398_s3 + $0x48] sm:$0xff]  ;;  %v220_v35 = vld [vmem:[%s3398_s3 + $0x40] sm:$0xff]  ;;  %v235_v36 = vld [vmem:[%s3398_s3 + $0xb8] sm:$0xff]  ;;  %v2624_v4 = vsub.s32 0, %v247_v3  ;;  %v2626_v5 = vsub.s32 1, %v247_v3 }
  0x11   :  { %1853 = vmatpush3.msra.mxu0 %v225_v25  ;;  %1888 = vmatpush3.msra.mxu1 %v225_v25  ;;  %v219_v37 = vld [vmem:[%s3398_s3 + $0x38] sm:$0xff]  ;;  %v234_v38 = vld [vmem:[%s3398_s3 + $0xb0] sm:$0xff]  ;;  %v233_v40 = vld [vmem:[%s3398_s3 + $0xa8] sm:$0xff] }
  0x12   :  { %1854 = vmatprep.subr.mxu0 %v240_v26  ;;  %1889 = vmatprep.subr.mxu1 %v240_v26  ;;  %v218_v39 = vld [vmem:[%s3398_s3 + $0x30] sm:$0xff]  ;;  %v217_v41 = vld [vmem:[%s3398_s3 + $0x28] sm:$0xff]  ;;  %v232_v42 = vld [vmem:[%s3398_s3 + $0xa0] sm:$0xff] }
  0x13   :  { %1855 = vmatpush3.msra.mxu0 %v224_v27  ;;  %1890 = vmatpush3.msra.mxu1 %v224_v27  ;;  %v216_v43 = vld [vmem:[%s3398_s3 + $0x20] sm:$0xff]  ;;  %v231_v44 = vld [vmem:[%s3398_s3 + $0x98] sm:$0xff]  ;;  %v230_v46 = vld [vmem:[%s3398_s3 + $0x90] sm:$0xff] }
  0x14   :  { %1856 = vmatprep.subr.mxu0 %v239_v28  ;;  %1891 = vmatprep.subr.mxu1 %v239_v28  ;;  %v215_v45 = vld [vmem:[%s3398_s3 + $0x18] sm:$0xff]  ;;  %v214_v47 = vld [vmem:[%s3398_s3 + $0x10] sm:$0xff]  ;;  %v229_v48 = vld [vmem:[%s3398_s3 + $0x88] sm:$0xff] }
  0x15   :  { %1857 = vmatpush3.msra.mxu0 %v223_v29  ;;  %1892 = vmatpush3.msra.mxu1 %v223_v29  ;;  %v213_v49 = vld [vmem:[%s3398_s3 + $0x8] sm:$0xff]  ;;  %v228_v50 = vld [vmem:[%s3398_s3 + $0x80] sm:$0xff]  ;;  %v442_v52 = vld [vmem:[%s3398_s3 + $0x1f8] sm:$0xff] }
  0x16   :  { %1858 = vmatprep.subr.mxu0 %v238_v30  ;;  %1893 = vmatprep.subr.mxu1 %v238_v30  ;;  %v212_v51 = vld [vmem:[%s3398_s3] sm:$0xff]  ;;  %v426_v13 = vld [vmem:[%s3398_s3 + $0x178] sm:$0xff]  ;;  %v441_v15 = vld [vmem:[%s3398_s3 + $0x1f0] sm:$0xff] }
  0x17   :  { %1859 = vmatpush3.msra.mxu0 %v222_v31  ;;  %1894 = vmatpush3.msra.mxu1 %v222_v31  ;;  %v425_v18 = vld [vmem:[%s3398_s3 + $0x170] sm:$0xff]  ;;  %v440_v19 = vld [vmem:[%s3398_s3 + $0x1e8] sm:$0xff]  ;;  %v439_v21 = vld [vmem:[%s3398_s3 + $0x1e0] sm:$0xff] }
  0x18   :  { %1860 = vmatprep.subr.mxu0 %v237_v32  ;;  %1895 = vmatprep.subr.mxu1 %v237_v32  ;;  %v424_v20 = vld [vmem:[%s3398_s3 + $0x168] sm:$0xff]  ;;  %v423_v22 = vld [vmem:[%s3398_s3 + $0x160] sm:$0xff]  ;;  %v438_v23 = vld [vmem:[%s3398_s3 + $0x1d8] sm:$0xff] }
  0x19   :  { %1861 = vmatpush3.msra.mxu0 %v221_v33  ;;  %1896 = vmatpush3.msra.mxu1 %v221_v33  ;;  %v422_v24 = vld [vmem:[%s3398_s3 + $0x158] sm:$0xff]  ;;  %v437_v25 = vld [vmem:[%s3398_s3 + $0x1d0] sm:$0xff]  ;;  %v436_v27 = vld [vmem:[%s3398_s3 + $0x1c8] sm:$0xff] }
  0x1a   :  { %1862 = vmatprep.subr.mxu0 %v236_v34  ;;  %1897 = vmatprep.subr.mxu1 %v236_v34  ;;  %v421_v26 = vld [vmem:[%s3398_s3 + $0x150] sm:$0xff]  ;;  %v420_v28 = vld [vmem:[%s3398_s3 + $0x148] sm:$0xff]  ;;  %v435_v29 = vld [vmem:[%s3398_s3 + $0x1c0] sm:$0xff] }
  0x1b   :  { %1863 = vmatpush3.msra.mxu0 %v220_v35  ;;  %1898 = vmatpush3.msra.mxu1 %v220_v35  ;;  %v419_v30 = vld [vmem:[%s3398_s3 + $0x140] sm:$0xff]  ;;  %v434_v31 = vld [vmem:[%s3398_s3 + $0x1b8] sm:$0xff]  ;;  %v433_v33 = vld [vmem:[%s3398_s3 + $0x1b0] sm:$0xff] }
  0x1c   :  { %1864 = vmatprep.subr.mxu0 %v235_v36  ;;  %1899 = vmatprep.subr.mxu1 %v235_v36  ;;  %v418_v32 = vld [vmem:[%s3398_s3 + $0x138] sm:$0xff]  ;;  %v417_v34 = vld [vmem:[%s3398_s3 + $0x130] sm:$0xff]  ;;  %v432_v35 = vld [vmem:[%s3398_s3 + $0x1a8] sm:$0xff] }
  0x1d   :  { %1865 = vmatpush3.msra.mxu0 %v219_v37  ;;  %1900 = vmatpush3.msra.mxu1 %v219_v37  ;;  %v416_v36 = vld [vmem:[%s3398_s3 + $0x128] sm:$0xff]  ;;  %v431_v37 = vld [vmem:[%s3398_s3 + $0x1a0] sm:$0xff] }
  0x1e   :  { %1866 = vmatprep.subr.mxu0 %v234_v38  ;;  %1901 = vmatprep.subr.mxu1 %v234_v38  ;;  %v415_v38 = vld [vmem:[%s3398_s3 + $0x120] sm:$0xff] }
  0x1f   :  { %1867 = vmatpush3.msra.mxu0 %v218_v39  ;;  %1902 = vmatpush3.msra.mxu1 %v218_v39  ;;  %v430_v39 = vld [vmem:[%s3398_s3 + $0x198] sm:$0xff]  ;;  %v623_v60 = vld [vmem:[%s3398_s3 + $0x260] sm:$0xff] }
  0x20   :  { %1868 = vmatprep.subr.mxu0 %v233_v40  ;;  %1903 = vmatprep.subr.mxu1 %v233_v40  ;;  %v414_v40 = vld [vmem:[%s3398_s3 + $0x118] sm:$0xff]  ;;  %v635_v3 = vld [vmem:[%s3398_s3 + $0x2c0] sm:$0xff] }
  0x21   :  { %1869 = vmatpush3.msra.mxu0 %v217_v41  ;;  %1904 = vmatpush3.msra.mxu1 %v217_v41  ;;  %v429_v41 = vld [vmem:[%s3398_s3 + $0x190] sm:$0xff] }
  0x22   :  { %1870 = vmatprep.subr.mxu0 %v232_v42  ;;  %1905 = vmatprep.subr.mxu1 %v232_v42  ;;  %v413_v42 = vld [vmem:[%s3398_s3 + $0x110] sm:$0xff] }
  0x23   :  { %1871 = vmatpush3.msra.mxu0 %v216_v43  ;;  %1906 = vmatpush3.msra.mxu1 %v216_v43  ;;  %v428_v43 = vld [vmem:[%s3398_s3 + $0x188] sm:$0xff] }
  0x24   :  { %1872 = vmatprep.subr.mxu0 %v231_v44  ;;  %1907 = vmatprep.subr.mxu1 %v231_v44  ;;  %v412_v44 = vld [vmem:[%s3398_s3 + $0x108] sm:$0xff] }
  0x25   :  { %1873 = vmatpush3.msra.mxu0 %v215_v45  ;;  %1908 = vmatpush3.msra.mxu1 %v215_v45  ;;  %v427_v45 = vld [vmem:[%s3398_s3 + $0x180] sm:$0xff] }
  0x26   :  { %1874 = vmatprep.subr.mxu0 %v230_v46  ;;  %1909 = vmatprep.subr.mxu1 %v230_v46  ;;  %v411_v46 = vld [vmem:[%s3398_s3 + $0x100] sm:$0xff] }
  0x27   :  { %1875 = vmatpush3.msra.mxu0 %v214_v47  ;;  %1910 = vmatpush3.msra.mxu1 %v214_v47 }
  0x28   :  { %1876 = vmatprep.subr.mxu0 %v229_v48  ;;  %1911 = vmatprep.subr.mxu1 %v229_v48 }
  0x29   :  { %1877 = vmatpush3.msra.mxu0 %v213_v49  ;;  %1912 = vmatpush3.msra.mxu1 %v213_v49 }
  0x2a   :  { %1878 = vmatprep.subr.mxu0 %v228_v50  ;;  %1913 = vmatprep.subr.mxu1 %v228_v50  ;;  %v642_v50 = vld [vmem:[%s3398_s3 + $0x2f8] sm:$0xff] }
  0x2b   :  { %1879 = vmatpush3.msra.mxu0 %v212_v51  ;;  %1914 = vmatpush3.msra.mxu1 %v212_v51 }
  0x2c   :  { %1918 = vmatprep.subr.mxu0 %v442_v52  ;;  %1953 = vmatprep.subr.mxu1 %v442_v52  ;;  %v626_v52 = vld [vmem:[%s3398_s3 + $0x278] sm:$0xff] }
  0x87   :  { %v42_v53 = vpop.permute.xlu0 %41 }
  0xca   :  { %v127_v54 = vpop.f32.mrf.mxu0  ;;  %v198_v55 = vpop.f32.mrf.mxu1 }
  0xcb   :  { %v128_v56 = vadd.f32 %v127_v54, %v42_v53  ;;  %v199_v57 = vadd.f32 %v198_v55, %v42_v53  ;;  %v641_v55 = vld [vmem:[%s3398_s3 + $0x2f0] sm:$0xff] }
  0xcc   :  { %v129_v58 = vpop.f32.mrf.mxu0  ;;  %v200_v59 = vpop.f32.mrf.mxu1 }
  0xcd   :  { %v203_v61 = vmax.f32 %v128_v56, 0.0  ;;  %v205_v62 = vmax.f32 %v199_v57, 0.0  ;;  %v130_v63 = vadd.f32 %v129_v58, %v42_v53  ;;  %v201_v0 = vadd.f32 %v200_v59, %v42_v53  ;;  %v625_v56 = vld [vmem:[%s3398_s3 + $0x270] sm:$0xff]  ;;  %v640_v57 = vld [vmem:[%s3398_s3 + $0x2e8] sm:$0xff]  ;;  %v639_v59 = vld [vmem:[%s3398_s3 + $0x2e0] sm:$0xff] }
  0xce   :  { %v624_v58 = vld [vmem:[%s3398_s3 + $0x268] sm:$0xff] }
  0xcf   :  { %207 = vst [vmem:[#allocation2] sm:$0xff] %v203_v61  ;;  %209 = vst [vmem:[#allocation2 + $0x10] sm:$0xff] %v205_v62  ;;  %v204_v1 = vmax.f32 %v130_v63, 0.0  ;;  %v206_v2 = vmax.f32 %v201_v0, 0.0  ;;  %v638_v61 = vld [vmem:[%s3398_s3 + $0x2d8] sm:$0xff]  ;;  %v637_v63 = vld [vmem:[%s3398_s3 + $0x2d0] sm:$0xff] }
  0xd0   :  { %v622_v62 = vld [vmem:[%s3398_s3 + $0x258] sm:$0xff]  ;;  %v621_v0 = vld [vmem:[%s3398_s3 + $0x250] sm:$0xff] }
  0xd1   :  { %208 = vst [vmem:[#allocation2 + $0x8] sm:$0xff] %v204_v1  ;;  %210 = vst [vmem:[#allocation2 + $0x18] sm:$0xff] %v206_v2  ;;  %v636_v1 = vld [vmem:[%s3398_s3 + $0x2c8] sm:$0xff] }
  0xd2   :  { %v620_v2 = vld [vmem:[%s3398_s3 + $0x248] sm:$0xff] }
  0xd8   :  { %v244_v6 = vld [vmem:[#allocation2] ss:$8 sm:$0x3]  ;;  %v328_v7 = vld [vmem:[#allocation2 + $0x10] ss:$8 sm:$0x3] }
  0xd9   :  { %v249_v8 = vrot.slane %v244_v6, %v2624_v4  ;;  %v253_v9 = vrot.slane %v244_v6, %v2626_v5  ;;  %v333_v10 = vrot.slane %v328_v7, %v2624_v4  ;;  %v337_v11 = vrot.slane %v328_v7, %v2626_v5  ;;  %v2632_v12 = vld [vmem:[#allocation2 + $0x1] ss:$8 sm:$0x3]  ;;  %v2637_v14 = vld [vmem:[#allocation2 + $0x11] ss:$8 sm:$0x3] }
  0xda   :  { %v453_v16 = vrot.slane %v2632_v12, %v2626_v5  ;;  %v537_v17 = vrot.slane %v2637_v14, %v2626_v5  ;;  %v2733_v47 = vld [vmem:[#allocation2 + $0x2] ss:$8 sm:$0x3]  ;;  %v449_v48 = vrot.slane %v2632_v12, %v2624_v4  ;;  %v533_v49 = vrot.slane %v2637_v14, %v2624_v4  ;;  %v2742_v51 = vld [vmem:[#allocation2 + $0x12] ss:$8 sm:$0x3] }
  0xdb   :  { %320 = vmatprep.mubr.f32.mxu0 %v253_v9  ;;  %404 = vmatprep.mubr.f32.mxu1 %v337_v11  ;;  %v653_v53 = vrot.slane %v2733_v47, %v2626_v5  ;;  %v737_v54 = vrot.slane %v2742_v51, %v2626_v5  ;;  %v619_v6 = vld [vmem:[%s3398_s3 + $0x240] sm:$0xff]  ;;  %v634_v7 = vld [vmem:[%s3398_s3 + $0x2b8] sm:$0xff]  ;;  %v633_v9 = vld [vmem:[%s3398_s3 + $0x2b0] sm:$0xff] }
  0xdc   :  { %321 = vmatmul.mubr.f32.vlgmr.msra.gmra.mxu0 %v249_v8  ;;  %405 = vmatmul.mubr.f32.vlgmr.msra.gmra.mxu1 %v333_v10  ;;  %v618_v8 = vld [vmem:[%s3398_s3 + $0x238] sm:$0xff]  ;;  %v617_v10 = vld [vmem:[%s3398_s3 + $0x230] sm:$0xff]  ;;  %v632_v11 = vld [vmem:[%s3398_s3 + $0x2a8] sm:$0xff] }
  0xdd   :  { %1919 = vmatpush3.msra.mxu0 %v426_v13  ;;  %1954 = vmatpush3.msra.mxu1 %v426_v13  ;;  %v616_v12 = vld [vmem:[%s3398_s3 + $0x228] sm:$0xff]  ;;  %v631_v13 = vld [vmem:[%s3398_s3 + $0x2a0] sm:$0xff] }
  0xde   :  { %1920 = vmatprep.subr.mxu0 %v441_v15  ;;  %520 = vmatprep.mubr.f32.mxu0 %v453_v16  ;;  %v615_v14 = vld [vmem:[%s3398_s3 + $0x220] sm:$0xff]  ;;  %v614_v16 = vld [vmem:[%s3398_s3 + $0x218] sm:$0xff] }
  0xdf   :  { %1955 = vmatprep.subr.mxu1 %v441_v15  ;;  %604 = vmatprep.mubr.f32.mxu1 %v537_v17  ;;  %v630_v15 = vld [vmem:[%s3398_s3 + $0x298] sm:$0xff]  ;;  %v629_v17 = vld [vmem:[%s3398_s3 + $0x290] sm:$0xff] }
  0xe0   :  { %1921 = vmatpush3.msra.mxu0 %v425_v18  ;;  %1956 = vmatpush3.msra.mxu1 %v425_v18  ;;  %v613_v18 = vld [vmem:[%s3398_s3 + $0x210] sm:$0xff] }
  0xe1   :  { %1922 = vmatprep.subr.mxu0 %v440_v19  ;;  %1957 = vmatprep.subr.mxu1 %v440_v19  ;;  %v628_v19 = vld [vmem:[%s3398_s3 + $0x288] sm:$0xff] }
  0xe2   :  { %1923 = vmatpush3.msra.mxu0 %v424_v20  ;;  %1958 = vmatpush3.msra.mxu1 %v424_v20  ;;  %v612_v20 = vld [vmem:[%s3398_s3 + $0x208] sm:$0xff] }
  0xe3   :  { %1924 = vmatprep.subr.mxu0 %v439_v21  ;;  %1959 = vmatprep.subr.mxu1 %v439_v21  ;;  %v627_v21 = vld [vmem:[%s3398_s3 + $0x280] sm:$0xff] }
  0xe4   :  { %1925 = vmatpush3.msra.mxu0 %v423_v22  ;;  %1960 = vmatpush3.msra.mxu1 %v423_v22  ;;  %v611_v22 = vld [vmem:[%s3398_s3 + $0x200] sm:$0xff] }
  0xe5   :  { %1926 = vmatprep.subr.mxu0 %v438_v23  ;;  %1961 = vmatprep.subr.mxu1 %v438_v23  ;;  %v2841_v23 = vld [vmem:[#allocation2 + $0x3] ss:$8 sm:$0x3] }
  0xe6   :  { %1927 = vmatpush3.msra.mxu0 %v422_v24  ;;  %1962 = vmatpush3.msra.mxu1 %v422_v24  ;;  %v649_v24 = vrot.slane %v2733_v47, %v2624_v4  ;;  %v833_v47 = vld [vmem:[%s3398_s3 + $0x3b0] sm:$0xff] }
  0xe7   :  { %1928 = vmatprep.subr.mxu0 %v437_v25  ;;  %1963 = vmatprep.subr.mxu1 %v437_v25  ;;  %v733_v25 = vrot.slane %v2742_v51, %v2624_v4  ;;  %v831_v51 = vld [vmem:[%s3398_s3 + $0x3a0] sm:$0xff] }
  0xe8   :  { %1929 = vmatpush3.msra.mxu0 %v421_v26  ;;  %1964 = vmatpush3.msra.mxu1 %v421_v26  ;;  %v842_v26 = vld [vmem:[%s3398_s3 + $0x3f8] sm:$0xff] }
  0xe9   :  { %1930 = vmatprep.subr.mxu0 %v436_v27  ;;  %1965 = vmatprep.subr.mxu1 %v436_v27  ;;  %v2850_v27 = vld [vmem:[#allocation2 + $0x13] ss:$8 sm:$0x3] }
  0xea   :  { %1931 = vmatpush3.msra.mxu0 %v420_v28  ;;  %1966 = vmatpush3.msra.mxu1 %v420_v28  ;;  %v826_v28 = vld [vmem:[%s3398_s3 + $0x378] sm:$0xff] }
  0xeb   :  { %1932 = vmatprep.subr.mxu0 %v435_v29  ;;  %1967 = vmatprep.subr.mxu1 %v435_v29  ;;  %v853_v29 = vrot.slane %v2841_v23, %v2626_v5 }
  0xec   :  { %1933 = vmatpush3.msra.mxu0 %v419_v30  ;;  %1968 = vmatpush3.msra.mxu1 %v419_v30  ;;  %v937_v30 = vrot.slane %v2850_v27, %v2626_v5 }
  0xed   :  { %1934 = vmatprep.subr.mxu0 %v434_v31  ;;  %1969 = vmatprep.subr.mxu1 %v434_v31  ;;  %v841_v31 = vld [vmem:[%s3398_s3 + $0x3f0] sm:$0xff] }
  0xee   :  { %1935 = vmatpush3.msra.mxu0 %v418_v32  ;;  %1970 = vmatpush3.msra.mxu1 %v418_v32  ;;  %v825_v32 = vld [vmem:[%s3398_s3 + $0x370] sm:$0xff] }
  0xef   :  { %1936 = vmatprep.subr.mxu0 %v433_v33  ;;  %1971 = vmatprep.subr.mxu1 %v433_v33  ;;  %v840_v33 = vld [vmem:[%s3398_s3 + $0x3e8] sm:$0xff] }
  0xf0   :  { %1937 = vmatpush3.msra.mxu0 %v417_v34  ;;  %1972 = vmatpush3.msra.mxu1 %v417_v34  ;;  %v824_v34 = vld [vmem:[%s3398_s3 + $0x368] sm:$0xff] }
  0xf1   :  { %1938 = vmatprep.subr.mxu0 %v432_v35  ;;  %1973 = vmatprep.subr.mxu1 %v432_v35  ;;  %v839_v35 = vld [vmem:[%s3398_s3 + $0x3e0] sm:$0xff] }
  0xf2   :  { %1939 = vmatpush3.msra.mxu0 %v416_v36  ;;  %1974 = vmatpush3.msra.mxu1 %v416_v36  ;;  %v823_v36 = vld [vmem:[%s3398_s3 + $0x360] sm:$0xff] }
  0xf3   :  { %1940 = vmatprep.subr.mxu0 %v431_v37  ;;  %1975 = vmatprep.subr.mxu1 %v431_v37  ;;  %v838_v37 = vld [vmem:[%s3398_s3 + $0x3d8] sm:$0xff] }
  0xf4   :  { %1941 = vmatpush3.msra.mxu0 %v415_v38  ;;  %1976 = vmatpush3.msra.mxu1 %v415_v38  ;;  %v822_v38 = vld [vmem:[%s3398_s3 + $0x358] sm:$0xff] }
  0xf5   :  { %1942 = vmatprep.subr.mxu0 %v430_v39  ;;  %1977 = vmatprep.subr.mxu1 %v430_v39  ;;  %v837_v39 = vld [vmem:[%s3398_s3 + $0x3d0] sm:$0xff] }
  0xf6   :  { %1943 = vmatpush3.msra.mxu0 %v414_v40  ;;  %1978 = vmatpush3.msra.mxu1 %v414_v40  ;;  %v821_v40 = vld [vmem:[%s3398_s3 + $0x350] sm:$0xff] }
  0xf7   :  { %1944 = vmatprep.subr.mxu0 %v429_v41  ;;  %1979 = vmatprep.subr.mxu1 %v429_v41  ;;  %v836_v41 = vld [vmem:[%s3398_s3 + $0x3c8] sm:$0xff] }
  0xf8   :  { %1945 = vmatpush3.msra.mxu0 %v413_v42  ;;  %1980 = vmatpush3.msra.mxu1 %v413_v42  ;;  %v820_v42 = vld [vmem:[%s3398_s3 + $0x348] sm:$0xff] }
  0xf9   :  { %1946 = vmatprep.subr.mxu0 %v428_v43  ;;  %1981 = vmatprep.subr.mxu1 %v428_v43  ;;  %v835_v43 = vld [vmem:[%s3398_s3 + $0x3c0] sm:$0xff] }
  0xfa   :  { %1947 = vmatpush3.msra.mxu0 %v412_v44  ;;  %1982 = vmatpush3.msra.mxu1 %v412_v44  ;;  %v819_v44 = vld [vmem:[%s3398_s3 + $0x340] sm:$0xff] }
  0xfb   :  { %1948 = vmatprep.subr.mxu0 %v427_v45  ;;  %1983 = vmatprep.subr.mxu1 %v427_v45  ;;  %v834_v45 = vld [vmem:[%s3398_s3 + $0x3b8] sm:$0xff] }
  0xfc   :  { %1949 = vmatpush3.msra.mxu0 %v411_v46  ;;  %1984 = vmatpush3.msra.mxu1 %v411_v46  ;;  %v818_v46 = vld [vmem:[%s3398_s3 + $0x338] sm:$0xff] }
  0xfd   :  { %521 = vmatmul.mubr.f32.vlgmr.msra.gmra.mxu0 %v449_v48  ;;  %605 = vmatmul.mubr.f32.vlgmr.msra.gmra.mxu1 %v533_v49  ;;  %v817_v48 = vld [vmem:[%s3398_s3 + $0x330] sm:$0xff]  ;;  %v832_v49 = vld [vmem:[%s3398_s3 + $0x3a8] sm:$0xff] }
  0xfe   :  { %1988 = vmatprep.subr.mxu0 %v642_v50  ;;  %2023 = vmatprep.subr.mxu1 %v642_v50  ;;  %v816_v50 = vld [vmem:[%s3398_s3 + $0x328] sm:$0xff] }
  0xff   :  { %1989 = vmatpush3.msra.mxu0 %v626_v52  ;;  %720 = vmatprep.mubr.f32.mxu0 %v653_v53  ;;  %v830_v53 = vld [vmem:[%s3398_s3 + $0x398] sm:$0xff] }
 0x100   :  { %2024 = vmatpush3.msra.mxu1 %v626_v52  ;;  %804 = vmatprep.mubr.f32.mxu1 %v737_v54  ;;  %v815_v52 = vld [vmem:[%s3398_s3 + $0x320] sm:$0xff]  ;;  %v814_v54 = vld [vmem:[%s3398_s3 + $0x318] sm:$0xff] }
 0x101   :  { %1990 = vmatprep.subr.mxu0 %v641_v55  ;;  %2025 = vmatprep.subr.mxu1 %v641_v55  ;;  %v829_v55 = vld [vmem:[%s3398_s3 + $0x390] sm:$0xff] }
 0x102   :  { %1991 = vmatpush3.msra.mxu0 %v625_v56  ;;  %2026 = vmatpush3.msra.mxu1 %v625_v56  ;;  %v813_v56 = vld [vmem:[%s3398_s3 + $0x310] sm:$0xff] }
 0x103   :  { %1992 = vmatprep.subr.mxu0 %v640_v57  ;;  %2027 = vmatprep.subr.mxu1 %v640_v57  ;;  %v828_v57 = vld [vmem:[%s3398_s3 + $0x388] sm:$0xff] }
 0x104   :  { %1993 = vmatpush3.msra.mxu0 %v624_v58  ;;  %2028 = vmatpush3.msra.mxu1 %v624_v58  ;;  %v812_v58 = vld [vmem:[%s3398_s3 + $0x308] sm:$0xff] }
 0x105   :  { %1994 = vmatprep.subr.mxu0 %v639_v59  ;;  %2029 = vmatprep.subr.mxu1 %v639_v59  ;;  %v827_v59 = vld [vmem:[%s3398_s3 + $0x380] sm:$0xff] }
 0x106   :  { %1995 = vmatpush3.msra.mxu0 %v623_v60  ;;  %2030 = vmatpush3.msra.mxu1 %v623_v60  ;;  %v811_v60 = vld [vmem:[%s3398_s3 + $0x300] sm:$0xff] }
 0x107   :  { %1996 = vmatprep.subr.mxu0 %v638_v61  ;;  %2031 = vmatprep.subr.mxu1 %v638_v61  ;;  %v2949_v61 = vld [vmem:[#allocation2 + $0x4] ss:$8 sm:$0x3] }
 0x108   :  { %1997 = vmatpush3.msra.mxu0 %v622_v62  ;;  %2032 = vmatpush3.msra.mxu1 %v622_v62  ;;  %v849_v62 = vrot.slane %v2841_v23, %v2624_v4  ;;  %v1033_v23 = vld [vmem:[%s3398_s3 + $0x4b0] sm:$0xff] }
 0x109   :  { %1998 = vmatprep.subr.mxu0 %v637_v63  ;;  %2033 = vmatprep.subr.mxu1 %v637_v63  ;;  %v933_v63 = vrot.slane %v2850_v27, %v2624_v4  ;;  %v1031_v27 = vld [vmem:[%s3398_s3 + $0x4a0] sm:$0xff] }
 0x10a   :  { %1999 = vmatpush3.msra.mxu0 %v621_v0  ;;  %2034 = vmatpush3.msra.mxu1 %v621_v0  ;;  %v1042_v0 = vld [vmem:[%s3398_s3 + $0x4f8] sm:$0xff] }
 0x10b   :  { %2000 = vmatprep.subr.mxu0 %v636_v1  ;;  %2035 = vmatprep.subr.mxu1 %v636_v1  ;;  %v2958_v1 = vld [vmem:[#allocation2 + $0x14] ss:$8 sm:$0x3] }
 0x10c   :  { %2001 = vmatpush3.msra.mxu0 %v620_v2  ;;  %2036 = vmatpush3.msra.mxu1 %v620_v2  ;;  %v1026_v2 = vld [vmem:[%s3398_s3 + $0x478] sm:$0xff] }
 0x10d   :  { %2002 = vmatprep.subr.mxu0 %v635_v3  ;;  %2037 = vmatprep.subr.mxu1 %v635_v3  ;;  %v1053_v3 = vrot.slane %v2949_v61, %v2626_v5 }
 0x10e   :  { %2003 = vmatpush3.msra.mxu0 %v619_v6  ;;  %2038 = vmatpush3.msra.mxu1 %v619_v6  ;;  %v1137_v6 = vrot.slane %v2958_v1, %v2626_v5 }
 0x10f   :  { %2004 = vmatprep.subr.mxu0 %v634_v7  ;;  %2039 = vmatprep.subr.mxu1 %v634_v7  ;;  %v1041_v7 = vld [vmem:[%s3398_s3 + $0x4f0] sm:$0xff] }
 0x110   :  { %2005 = vmatpush3.msra.mxu0 %v618_v8  ;;  %2040 = vmatpush3.msra.mxu1 %v618_v8  ;;  %v1025_v8 = vld [vmem:[%s3398_s3 + $0x470] sm:$0xff] }
 0x111   :  { %2006 = vmatprep.subr.mxu0 %v633_v9  ;;  %2041 = vmatprep.subr.mxu1 %v633_v9  ;;  %v1040_v9 = vld [vmem:[%s3398_s3 + $0x4e8] sm:$0xff] }
 0x112   :  { %2007 = vmatpush3.msra.mxu0 %v617_v10  ;;  %2042 = vmatpush3.msra.mxu1 %v617_v10  ;;  %v1024_v10 = vld [vmem:[%s3398_s3 + $0x468] sm:$0xff] }
 0x113   :  { %2008 = vmatprep.subr.mxu0 %v632_v11  ;;  %2043 = vmatprep.subr.mxu1 %v632_v11  ;;  %v1039_v11 = vld [vmem:[%s3398_s3 + $0x4e0] sm:$0xff] }
 0x114   :  { %2009 = vmatpush3.msra.mxu0 %v616_v12  ;;  %2044 = vmatpush3.msra.mxu1 %v616_v12  ;;  %v1023_v12 = vld [vmem:[%s3398_s3 + $0x460] sm:$0xff] }
 0x115   :  { %2010 = vmatprep.subr.mxu0 %v631_v13  ;;  %2045 = vmatprep.subr.mxu1 %v631_v13  ;;  %v1038_v13 = vld [vmem:[%s3398_s3 + $0x4d8] sm:$0xff] }
 0x116   :  { %2011 = vmatpush3.msra.mxu0 %v615_v14  ;;  %2046 = vmatpush3.msra.mxu1 %v615_v14  ;;  %v1022_v14 = vld [vmem:[%s3398_s3 + $0x458] sm:$0xff] }
 0x117   :  { %2012 = vmatprep.subr.mxu0 %v630_v15  ;;  %2047 = vmatprep.subr.mxu1 %v630_v15  ;;  %v1037_v15 = vld [vmem:[%s3398_s3 + $0x4d0] sm:$0xff] }
 0x118   :  { %2013 = vmatpush3.msra.mxu0 %v614_v16  ;;  %2048 = vmatpush3.msra.mxu1 %v614_v16  ;;  %v1021_v16 = vld [vmem:[%s3398_s3 + $0x450] sm:$0xff] }
 0x119   :  { %2014 = vmatprep.subr.mxu0 %v629_v17  ;;  %2049 = vmatprep.subr.mxu1 %v629_v17  ;;  %v1036_v17 = vld [vmem:[%s3398_s3 + $0x4c8] sm:$0xff] }
 0x11a   :  { %2015 = vmatpush3.msra.mxu0 %v613_v18  ;;  %2050 = vmatpush3.msra.mxu1 %v613_v18  ;;  %v1020_v18 = vld [vmem:[%s3398_s3 + $0x448] sm:$0xff] }
 0x11b   :  { %2016 = vmatprep.subr.mxu0 %v628_v19  ;;  %2051 = vmatprep.subr.mxu1 %v628_v19  ;;  %v1035_v19 = vld [vmem:[%s3398_s3 + $0x4c0] sm:$0xff] }
 0x11c   :  { %2017 = vmatpush3.msra.mxu0 %v612_v20  ;;  %2052 = vmatpush3.msra.mxu1 %v612_v20  ;;  %v1019_v20 = vld [vmem:[%s3398_s3 + $0x440] sm:$0xff] }
 0x11d   :  { %2018 = vmatprep.subr.mxu0 %v627_v21  ;;  %2053 = vmatprep.subr.mxu1 %v627_v21  ;;  %v1034_v21 = vld [vmem:[%s3398_s3 + $0x4b8] sm:$0xff] }
 0x11e   :  { %2019 = vmatpush3.msra.mxu0 %v611_v22  ;;  %2054 = vmatpush3.msra.mxu1 %v611_v22  ;;  %v1018_v22 = vld [vmem:[%s3398_s3 + $0x438] sm:$0xff] }
 0x11f   :  { %721 = vmatmul.mubr.f32.vlgmr.msra.gmra.mxu0 %v649_v24  ;;  %805 = vmatmul.mubr.f32.vlgmr.msra.gmra.mxu1 %v733_v25  ;;  %v1017_v24 = vld [vmem:[%s3398_s3 + $0x430] sm:$0xff]  ;;  %v1032_v25 = vld [vmem:[%s3398_s3 + $0x4a8] sm:$0xff] }
 0x120   :  { %2058 = vmatprep.subr.mxu0 %v842_v26  ;;  %2093 = vmatprep.subr.mxu1 %v842_v26  ;;  %v1016_v26 = vld [vmem:[%s3398_s3 + $0x428] sm:$0xff] }
 0x121   :  { %2059 = vmatpush3.msra.mxu0 %v826_v28  ;;  %920 = vmatprep.mubr.f32.mxu0 %v853_v29  ;;  %v1030_v29 = vld [vmem:[%s3398_s3 + $0x498] sm:$0xff] }
 0x122   :  { %2094 = vmatpush3.msra.mxu1 %v826_v28  ;;  %1004 = vmatprep.mubr.f32.mxu1 %v937_v30  ;;  %v1015_v28 = vld [vmem:[%s3398_s3 + $0x420] sm:$0xff]  ;;  %v1014_v30 = vld [vmem:[%s3398_s3 + $0x418] sm:$0xff] }
 0x123   :  { %2060 = vmatprep.subr.mxu0 %v841_v31  ;;  %2095 = vmatprep.subr.mxu1 %v841_v31  ;;  %v1029_v31 = vld [vmem:[%s3398_s3 + $0x490] sm:$0xff] }
 0x124   :  { %2061 = vmatpush3.msra.mxu0 %v825_v32  ;;  %2096 = vmatpush3.msra.mxu1 %v825_v32  ;;  %v1013_v32 = vld [vmem:[%s3398_s3 + $0x410] sm:$0xff] }
 0x125   :  { %2062 = vmatprep.subr.mxu0 %v840_v33  ;;  %2097 = vmatprep.subr.mxu1 %v840_v33  ;;  %v1028_v33 = vld [vmem:[%s3398_s3 + $0x488] sm:$0xff] }
 0x126   :  { %2063 = vmatpush3.msra.mxu0 %v824_v34  ;;  %2098 = vmatpush3.msra.mxu1 %v824_v34  ;;  %v1012_v34 = vld [vmem:[%s3398_s3 + $0x408] sm:$0xff] }
 0x127   :  { %2064 = vmatprep.subr.mxu0 %v839_v35  ;;  %2099 = vmatprep.subr.mxu1 %v839_v35  ;;  %v1027_v35 = vld [vmem:[%s3398_s3 + $0x480] sm:$0xff] }
 0x128   :  { %2065 = vmatpush3.msra.mxu0 %v823_v36  ;;  %2100 = vmatpush3.msra.mxu1 %v823_v36  ;;  %v1011_v36 = vld [vmem:[%s3398_s3 + $0x400] sm:$0xff] }
 0x129   :  { %2066 = vmatprep.subr.mxu0 %v838_v37  ;;  %2101 = vmatprep.subr.mxu1 %v838_v37  ;;  %v3057_v37 = vld [vmem:[#allocation2 + $0x5] ss:$8 sm:$0x3] }
 0x12a   :  { %2067 = vmatpush3.msra.mxu0 %v822_v38  ;;  %2102 = vmatpush3.msra.mxu1 %v822_v38  ;;  %v1049_v38 = vrot.slane %v2949_v61, %v2624_v4  ;;  %v1233_v61 = vld [vmem:[%s3398_s3 + $0x5b0] sm:$0xff] }
 0x12b   :  { %2068 = vmatprep.subr.mxu0 %v837_v39  ;;  %2103 = vmatprep.subr.mxu1 %v837_v39  ;;  %v1133_v39 = vrot.slane %v2958_v1, %v2624_v4  ;;  %v1231_v1 = vld [vmem:[%s3398_s3 + $0x5a0] sm:$0xff] }
 0x12c   :  { %2069 = vmatpush3.msra.mxu0 %v821_v40  ;;  %2104 = vmatpush3.msra.mxu1 %v821_v40  ;;  %v1242_v40 = vld [vmem:[%s3398_s3 + $0x5f8] sm:$0xff] }
 0x12d   :  { %2070 = vmatprep.subr.mxu0 %v836_v41  ;;  %2105 = vmatprep.subr.mxu1 %v836_v41  ;;  %v3066_v41 = vld [vmem:[#allocation2 + $0x15] ss:$8 sm:$0x3] }
 0x12e   :  { %2071 = vmatpush3.msra.mxu0 %v820_v42  ;;  %2106 = vmatpush3.msra.mxu1 %v820_v42  ;;  %v1226_v42 = vld [vmem:[%s3398_s3 + $0x578] sm:$0xff] }
 0x12f   :  { %2072 = vmatprep.subr.mxu0 %v835_v43  ;;  %2107 = vmatprep.subr.mxu1 %v835_v43  ;;  %v1253_v43 = vrot.slane %v3057_v37, %v2626_v5 }
 0x130   :  { %2073 = vmatpush3.msra.mxu0 %v819_v44  ;;  %2108 = vmatpush3.msra.mxu1 %v819_v44  ;;  %v1337_v44 = vrot.slane %v3066_v41, %v2626_v5 }
 0x131   :  { %2074 = vmatprep.subr.mxu0 %v834_v45  ;;  %2109 = vmatprep.subr.mxu1 %v834_v45  ;;  %v1241_v45 = vld [vmem:[%s3398_s3 + $0x5f0] sm:$0xff] }
 0x132   :  { %2075 = vmatpush3.msra.mxu0 %v818_v46  ;;  %2110 = vmatpush3.msra.mxu1 %v818_v46  ;;  %v1225_v46 = vld [vmem:[%s3398_s3 + $0x570] sm:$0xff] }
 0x133   :  { %2076 = vmatprep.subr.mxu0 %v833_v47  ;;  %2111 = vmatprep.subr.mxu1 %v833_v47  ;;  %v1240_v47 = vld [vmem:[%s3398_s3 + $0x5e8] sm:$0xff] }
 0x134   :  { %2077 = vmatpush3.msra.mxu0 %v817_v48  ;;  %2112 = vmatpush3.msra.mxu1 %v817_v48  ;;  %v1224_v48 = vld [vmem:[%s3398_s3 + $0x568] sm:$0xff] }
 0x135   :  { %2078 = vmatprep.subr.mxu0 %v832_v49  ;;  %2113 = vmatprep.subr.mxu1 %v832_v49  ;;  %v1239_v49 = vld [vmem:[%s3398_s3 + $0x5e0] sm:$0xff] }
 0x136   :  { %2079 = vmatpush3.msra.mxu0 %v816_v50  ;;  %2114 = vmatpush3.msra.mxu1 %v816_v50  ;;  %v1223_v50 = vld [vmem:[%s3398_s3 + $0x560] sm:$0xff] }
 0x137   :  { %2080 = vmatprep.subr.mxu0 %v831_v51  ;;  %2115 = vmatprep.subr.mxu1 %v831_v51  ;;  %v1238_v51 = vld [vmem:[%s3398_s3 + $0x5d8] sm:$0xff] }
 0x138   :  { %2081 = vmatpush3.msra.mxu0 %v815_v52  ;;  %2116 = vmatpush3.msra.mxu1 %v815_v52  ;;  %v1222_v52 = vld [vmem:[%s3398_s3 + $0x558] sm:$0xff] }
 0x139   :  { %2082 = vmatprep.subr.mxu0 %v830_v53  ;;  %2117 = vmatprep.subr.mxu1 %v830_v53  ;;  %v1237_v53 = vld [vmem:[%s3398_s3 + $0x5d0] sm:$0xff] }
 0x13a   :  { %2083 = vmatpush3.msra.mxu0 %v814_v54  ;;  %2118 = vmatpush3.msra.mxu1 %v814_v54  ;;  %v1221_v54 = vld [vmem:[%s3398_s3 + $0x550] sm:$0xff] }
 0x13b   :  { %2084 = vmatprep.subr.mxu0 %v829_v55  ;;  %2119 = vmatprep.subr.mxu1 %v829_v55  ;;  %v1236_v55 = vld [vmem:[%s3398_s3 + $0x5c8] sm:$0xff] }
 0x13c   :  { %2085 = vmatpush3.msra.mxu0 %v813_v56  ;;  %2120 = vmatpush3.msra.mxu1 %v813_v56  ;;  %v1220_v56 = vld [vmem:[%s3398_s3 + $0x548] sm:$0xff] }
 0x13d   :  { %2086 = vmatprep.subr.mxu0 %v828_v57  ;;  %2121 = vmatprep.subr.mxu1 %v828_v57  ;;  %v1235_v57 = vld [vmem:[%s3398_s3 + $0x5c0] sm:$0xff] }
 0x13e   :  { %2087 = vmatpush3.msra.mxu0 %v812_v58  ;;  %2122 = vmatpush3.msra.mxu1 %v812_v58  ;;  %v1219_v58 = vld [vmem:[%s3398_s3 + $0x540] sm:$0xff] }
 0x13f   :  { %2088 = vmatprep.subr.mxu0 %v827_v59  ;;  %2123 = vmatprep.subr.mxu1 %v827_v59  ;;  %v1234_v59 = vld [vmem:[%s3398_s3 + $0x5b8] sm:$0xff] }
 0x140   :  { %2089 = vmatpush3.msra.mxu0 %v811_v60  ;;  %2124 = vmatpush3.msra.mxu1 %v811_v60  ;;  %v1218_v60 = vld [vmem:[%s3398_s3 + $0x538] sm:$0xff] }
 0x141   :  { %921 = vmatmul.mubr.f32.vlgmr.msra.gmra.mxu0 %v849_v62  ;;  %1005 = vmatmul.mubr.f32.vlgmr.msra.gmra.mxu1 %v933_v63  ;;  %v1217_v62 = vld [vmem:[%s3398_s3 + $0x530] sm:$0xff]  ;;  %v1232_v63 = vld [vmem:[%s3398_s3 + $0x5a8] sm:$0xff] }
 0x142   :  { %2128 = vmatprep.subr.mxu0 %v1042_v0  ;;  %2163 = vmatprep.subr.mxu1 %v1042_v0  ;;  %v1216_v0 = vld [vmem:[%s3398_s3 + $0x528] sm:$0xff] }
 0x143   :  { %2129 = vmatpush3.msra.mxu0 %v1026_v2  ;;  %1120 = vmatprep.mubr.f32.mxu0 %v1053_v3  ;;  %v1230_v3 = vld [vmem:[%s3398_s3 + $0x598] sm:$0xff] }
 0x144   :  { %2164 = vmatpush3.msra.mxu1 %v1026_v2  ;;  %1204 = vmatprep.mubr.f32.mxu1 %v1137_v6  ;;  %v1215_v2 = vld [vmem:[%s3398_s3 + $0x520] sm:$0xff]  ;;  %v1214_v6 = vld [vmem:[%s3398_s3 + $0x518] sm:$0xff] }
 0x145   :  { %2130 = vmatprep.subr.mxu0 %v1041_v7  ;;  %2165 = vmatprep.subr.mxu1 %v1041_v7  ;;  %v1229_v7 = vld [vmem:[%s3398_s3 + $0x590] sm:$0xff] }
 0x146   :  { %2131 = vmatpush3.msra.mxu0 %v1025_v8  ;;  %2166 = vmatpush3.msra.mxu1 %v1025_v8  ;;  %v1213_v8 = vld [vmem:[%s3398_s3 + $0x510] sm:$0xff] }
 0x147   :  { %2132 = vmatprep.subr.mxu0 %v1040_v9  ;;  %2167 = vmatprep.subr.mxu1 %v1040_v9  ;;  %v1228_v9 = vld [vmem:[%s3398_s3 + $0x588] sm:$0xff] }
 0x148   :  { %2133 = vmatpush3.msra.mxu0 %v1024_v10  ;;  %2168 = vmatpush3.msra.mxu1 %v1024_v10  ;;  %v1212_v10 = vld [vmem:[%s3398_s3 + $0x508] sm:$0xff] }
 0x149   :  { %2134 = vmatprep.subr.mxu0 %v1039_v11  ;;  %2169 = vmatprep.subr.mxu1 %v1039_v11  ;;  %v1227_v11 = vld [vmem:[%s3398_s3 + $0x580] sm:$0xff] }
 0x14a   :  { %2135 = vmatpush3.msra.mxu0 %v1023_v12  ;;  %2170 = vmatpush3.msra.mxu1 %v1023_v12  ;;  %v1211_v12 = vld [vmem:[%s3398_s3 + $0x500] sm:$0xff] }
 0x14b   :  { %2136 = vmatprep.subr.mxu0 %v1038_v13  ;;  %2171 = vmatprep.subr.mxu1 %v1038_v13  ;;  %v3165_v13 = vld [vmem:[#allocation2 + $0x6] ss:$8 sm:$0x3] }
 0x14c   :  { %2137 = vmatpush3.msra.mxu0 %v1022_v14  ;;  %2172 = vmatpush3.msra.mxu1 %v1022_v14  ;;  %v1249_v14 = vrot.slane %v3057_v37, %v2624_v4  ;;  %v1433_v37 = vld [vmem:[%s3398_s3 + $0x6b0] sm:$0xff] }
 0x14d   :  { %2138 = vmatprep.subr.mxu0 %v1037_v15  ;;  %2173 = vmatprep.subr.mxu1 %v1037_v15  ;;  %v1333_v15 = vrot.slane %v3066_v41, %v2624_v4  ;;  %v1431_v41 = vld [vmem:[%s3398_s3 + $0x6a0] sm:$0xff] }
 0x14e   :  { %2139 = vmatpush3.msra.mxu0 %v1021_v16  ;;  %2174 = vmatpush3.msra.mxu1 %v1021_v16  ;;  %v1442_v16 = vld [vmem:[%s3398_s3 + $0x6f8] sm:$0xff] }
 0x14f   :  { %2140 = vmatprep.subr.mxu0 %v1036_v17  ;;  %2175 = vmatprep.subr.mxu1 %v1036_v17  ;;  %v3174_v17 = vld [vmem:[#allocation2 + $0x16] ss:$8 sm:$0x3] }
 0x150   :  { %2141 = vmatpush3.msra.mxu0 %v1020_v18  ;;  %2176 = vmatpush3.msra.mxu1 %v1020_v18  ;;  %v1426_v18 = vld [vmem:[%s3398_s3 + $0x678] sm:$0xff] }
 0x151   :  { %2142 = vmatprep.subr.mxu0 %v1035_v19  ;;  %2177 = vmatprep.subr.mxu1 %v1035_v19  ;;  %v1453_v19 = vrot.slane %v3165_v13, %v2626_v5 }
 0x152   :  { %2143 = vmatpush3.msra.mxu0 %v1019_v20  ;;  %2178 = vmatpush3.msra.mxu1 %v1019_v20  ;;  %v1537_v20 = vrot.slane %v3174_v17, %v2626_v5 }
 0x153   :  { %2144 = vmatprep.subr.mxu0 %v1034_v21  ;;  %2179 = vmatprep.subr.mxu1 %v1034_v21  ;;  %v1441_v21 = vld [vmem:[%s3398_s3 + $0x6f0] sm:$0xff] }
 0x154   :  { %2145 = vmatpush3.msra.mxu0 %v1018_v22  ;;  %2180 = vmatpush3.msra.mxu1 %v1018_v22  ;;  %v1425_v22 = vld [vmem:[%s3398_s3 + $0x670] sm:$0xff] }
 0x155   :  { %2146 = vmatprep.subr.mxu0 %v1033_v23  ;;  %2181 = vmatprep.subr.mxu1 %v1033_v23  ;;  %v1440_v23 = vld [vmem:[%s3398_s3 + $0x6e8] sm:$0xff] }
 0x156   :  { %2147 = vmatpush3.msra.mxu0 %v1017_v24  ;;  %2182 = vmatpush3.msra.mxu1 %v1017_v24  ;;  %v1424_v24 = vld [vmem:[%s3398_s3 + $0x668] sm:$0xff] }
 0x157   :  { %2148 = vmatprep.subr.mxu0 %v1032_v25  ;;  %2183 = vmatprep.subr.mxu1 %v1032_v25  ;;  %v1439_v25 = vld [vmem:[%s3398_s3 + $0x6e0] sm:$0xff] }
 0x158   :  { %2149 = vmatpush3.msra.mxu0 %v1016_v26  ;;  %2184 = vmatpush3.msra.mxu1 %v1016_v26  ;;  %v1423_v26 = vld [vmem:[%s3398_s3 + $0x660] sm:$0xff] }
 0x159   :  { %2150 = vmatprep.subr.mxu0 %v1031_v27  ;;  %2185 = vmatprep.subr.mxu1 %v1031_v27  ;;  %v1438_v27 = vld [vmem:[%s3398_s3 + $0x6d8] sm:$0xff] }
 0x15a   :  { %2151 = vmatpush3.msra.mxu0 %v1015_v28  ;;  %2186 = vmatpush3.msra.mxu1 %v1015_v28  ;;  %v1422_v28 = vld [vmem:[%s3398_s3 + $0x658] sm:$0xff] }
 0x15b   :  { %2152 = vmatprep.subr.mxu0 %v1030_v29  ;;  %2187 = vmatprep.subr.mxu1 %v1030_v29  ;;  %v1437_v29 = vld [vmem:[%s3398_s3 + $0x6d0] sm:$0xff] }
 0x15c   :  { %2153 = vmatpush3.msra.mxu0 %v1014_v30  ;;  %2188 = vmatpush3.msra.mxu1 %v1014_v30  ;;  %v1421_v30 = vld [vmem:[%s3398_s3 + $0x650] sm:$0xff] }
 0x15d   :  { %2154 = vmatprep.subr.mxu0 %v1029_v31  ;;  %2189 = vmatprep.subr.mxu1 %v1029_v31  ;;  %v1436_v31 = vld [vmem:[%s3398_s3 + $0x6c8] sm:$0xff] }
 0x15e   :  { %2155 = vmatpush3.msra.mxu0 %v1013_v32  ;;  %2190 = vmatpush3.msra.mxu1 %v1013_v32  ;;  %v1420_v32 = vld [vmem:[%s3398_s3 + $0x648] sm:$0xff] }
 0x15f   :  { %2156 = vmatprep.subr.mxu0 %v1028_v33  ;;  %2191 = vmatprep.subr.mxu1 %v1028_v33  ;;  %v1435_v33 = vld [vmem:[%s3398_s3 + $0x6c0] sm:$0xff] }
 0x160   :  { %2157 = vmatpush3.msra.mxu0 %v1012_v34  ;;  %2192 = vmatpush3.msra.mxu1 %v1012_v34  ;;  %v1419_v34 = vld [vmem:[%s3398_s3 + $0x640] sm:$0xff] }
 0x161   :  { %2158 = vmatprep.subr.mxu0 %v1027_v35  ;;  %2193 = vmatprep.subr.mxu1 %v1027_v35  ;;  %v1434_v35 = vld [vmem:[%s3398_s3 + $0x6b8] sm:$0xff] }
 0x162   :  { %2159 = vmatpush3.msra.mxu0 %v1011_v36  ;;  %2194 = vmatpush3.msra.mxu1 %v1011_v36  ;;  %v1418_v36 = vld [vmem:[%s3398_s3 + $0x638] sm:$0xff] }
 0x163   :  { %1121 = vmatmul.mubr.f32.vlgmr.msra.gmra.mxu0 %v1049_v38  ;;  %1205 = vmatmul.mubr.f32.vlgmr.msra.gmra.mxu1 %v1133_v39  ;;  %v1417_v38 = vld [vmem:[%s3398_s3 + $0x630] sm:$0xff]  ;;  %v1432_v39 = vld [vmem:[%s3398_s3 + $0x6a8] sm:$0xff] }
 0x164   :  { %2198 = vmatprep.subr.mxu0 %v1242_v40  ;;  %2233 = vmatprep.subr.mxu1 %v1242_v40  ;;  %v1416_v40 = vld [vmem:[%s3398_s3 + $0x628] sm:$0xff] }
 0x165   :  { %2199 = vmatpush3.msra.mxu0 %v1226_v42  ;;  %1320 = vmatprep.mubr.f32.mxu0 %v1253_v43  ;;  %v1430_v43 = vld [vmem:[%s3398_s3 + $0x698] sm:$0xff] }
 0x166   :  { %2234 = vmatpush3.msra.mxu1 %v1226_v42  ;;  %1404 = vmatprep.mubr.f32.mxu1 %v1337_v44  ;;  %v1415_v42 = vld [vmem:[%s3398_s3 + $0x620] sm:$0xff]  ;;  %v1414_v44 = vld [vmem:[%s3398_s3 + $0x618] sm:$0xff] }
 0x167   :  { %2200 = vmatprep.subr.mxu0 %v1241_v45  ;;  %2235 = vmatprep.subr.mxu1 %v1241_v45  ;;  %v1429_v45 = vld [vmem:[%s3398_s3 + $0x690] sm:$0xff] }
 0x168   :  { %2201 = vmatpush3.msra.mxu0 %v1225_v46  ;;  %2236 = vmatpush3.msra.mxu1 %v1225_v46  ;;  %v1413_v46 = vld [vmem:[%s3398_s3 + $0x610] sm:$0xff] }
 0x169   :  { %2202 = vmatprep.subr.mxu0 %v1240_v47  ;;  %2237 = vmatprep.subr.mxu1 %v1240_v47  ;;  %v1428_v47 = vld [vmem:[%s3398_s3 + $0x688] sm:$0xff] }
 0x16a   :  { %2203 = vmatpush3.msra.mxu0 %v1224_v48  ;;  %2238 = vmatpush3.msra.mxu1 %v1224_v48  ;;  %v1412_v48 = vld [vmem:[%s3398_s3 + $0x608] sm:$0xff] }
 0x16b   :  { %2204 = vmatprep.subr.mxu0 %v1239_v49  ;;  %2239 = vmatprep.subr.mxu1 %v1239_v49  ;;  %v1427_v49 = vld [vmem:[%s3398_s3 + $0x680] sm:$0xff] }
 0x16c   :  { %2205 = vmatpush3.msra.mxu0 %v1223_v50  ;;  %2240 = vmatpush3.msra.mxu1 %v1223_v50  ;;  %v1411_v50 = vld [vmem:[%s3398_s3 + $0x600] sm:$0xff] }
 0x16d   :  { %2206 = vmatprep.subr.mxu0 %v1238_v51  ;;  %2241 = vmatprep.subr.mxu1 %v1238_v51  ;;  %v3273_v51 = vld [vmem:[#allocation2 + $0x7] ss:$8 sm:$0x3] }
 0x16e   :  { %2207 = vmatpush3.msra.mxu0 %v1222_v52  ;;  %2242 = vmatpush3.msra.mxu1 %v1222_v52  ;;  %v1449_v52 = vrot.slane %v3165_v13, %v2624_v4  ;;  %v1617_v13 = vld [vmem:[%s3398_s3 + $0x730] sm:$0xff] }
 0x16f   :  { %2208 = vmatprep.subr.mxu0 %v1237_v53  ;;  %2243 = vmatprep.subr.mxu1 %v1237_v53  ;;  %v1533_v53 = vrot.slane %v3174_v17, %v2624_v4  ;;  %v1615_v17 = vld [vmem:[%s3398_s3 + $0x720] sm:$0xff] }
 0x170   :  { %2209 = vmatpush3.msra.mxu0 %v1221_v54  ;;  %2244 = vmatpush3.msra.mxu1 %v1221_v54  ;;  %v1642_v54 = vld [vmem:[%s3398_s3 + $0x7f8] sm:$0xff] }
 0x171   :  { %2210 = vmatprep.subr.mxu0 %v1236_v55  ;;  %2245 = vmatprep.subr.mxu1 %v1236_v55  ;;  %v3282_v55 = vld [vmem:[#allocation2 + $0x17] ss:$8 sm:$0x3] }
 0x172   :  { %2211 = vmatpush3.msra.mxu0 %v1220_v56  ;;  %2246 = vmatpush3.msra.mxu1 %v1220_v56  ;;  %v1626_v56 = vld [vmem:[%s3398_s3 + $0x778] sm:$0xff] }
 0x173   :  { %2212 = vmatprep.subr.mxu0 %v1235_v57  ;;  %2247 = vmatprep.subr.mxu1 %v1235_v57  ;;  %v1653_v57 = vrot.slane %v3273_v51, %v2626_v5 }
 0x174   :  { %2213 = vmatpush3.msra.mxu0 %v1219_v58  ;;  %2248 = vmatpush3.msra.mxu1 %v1219_v58  ;;  %v1737_v58 = vrot.slane %v3282_v55, %v2626_v5  ;;  %v1624_v5 = vld [vmem:[%s3398_s3 + $0x768] sm:$0xff] }
 0x175   :  { %2214 = vmatprep.subr.mxu0 %v1234_v59  ;;  %2249 = vmatprep.subr.mxu1 %v1234_v59  ;;  %v1641_v59 = vld [vmem:[%s3398_s3 + $0x7f0] sm:$0xff] }
 0x176   :  { %2215 = vmatpush3.msra.mxu0 %v1218_v60  ;;  %2250 = vmatpush3.msra.mxu1 %v1218_v60  ;;  %v1625_v60 = vld [vmem:[%s3398_s3 + $0x770] sm:$0xff] }
 0x177   :  { %2216 = vmatprep.subr.mxu0 %v1233_v61  ;;  %2251 = vmatprep.subr.mxu1 %v1233_v61  ;;  %v1640_v61 = vld [vmem:[%s3398_s3 + $0x7e8] sm:$0xff] }
 0x178   :  { %2217 = vmatpush3.msra.mxu0 %v1217_v62  ;;  %2252 = vmatpush3.msra.mxu1 %v1217_v62  ;;  %v1639_v62 = vld [vmem:[%s3398_s3 + $0x7e0] sm:$0xff] }
 0x179   :  { %2218 = vmatprep.subr.mxu0 %v1232_v63  ;;  %2253 = vmatprep.subr.mxu1 %v1232_v63  ;;  %v1623_v63 = vld [vmem:[%s3398_s3 + $0x760] sm:$0xff] }
 0x17a   :  { %2219 = vmatpush3.msra.mxu0 %v1216_v0  ;;  %2254 = vmatpush3.msra.mxu1 %v1216_v0  ;;  %v1638_v0 = vld [vmem:[%s3398_s3 + $0x7d8] sm:$0xff] }
 0x17b   :  { %2220 = vmatprep.subr.mxu0 %v1231_v1  ;;  %2255 = vmatprep.subr.mxu1 %v1231_v1  ;;  %v1622_v1 = vld [vmem:[%s3398_s3 + $0x758] sm:$0xff] }
 0x17c   :  { %2221 = vmatpush3.msra.mxu0 %v1215_v2  ;;  %2256 = vmatpush3.msra.mxu1 %v1215_v2  ;;  %v1637_v2 = vld [vmem:[%s3398_s3 + $0x7d0] sm:$0xff] }
 0x17d   :  { %2222 = vmatprep.subr.mxu0 %v1230_v3  ;;  %2257 = vmatprep.subr.mxu1 %v1230_v3  ;;  %v1621_v3 = vld [vmem:[%s3398_s3 + $0x750] sm:$0xff] }
 0x17e   :  { %2223 = vmatpush3.msra.mxu0 %v1214_v6  ;;  %2258 = vmatpush3.msra.mxu1 %v1214_v6  ;;  %v1636_v6 = vld [vmem:[%s3398_s3 + $0x7c8] sm:$0xff] }
 0x17f   :  { %2224 = vmatprep.subr.mxu0 %v1229_v7  ;;  %2259 = vmatprep.subr.mxu1 %v1229_v7  ;;  %v1620_v7 = vld [vmem:[%s3398_s3 + $0x748] sm:$0xff] }
 0x180   :  { %2225 = vmatpush3.msra.mxu0 %v1213_v8  ;;  %2260 = vmatpush3.msra.mxu1 %v1213_v8  ;;  %v1635_v8 = vld [vmem:[%s3398_s3 + $0x7c0] sm:$0xff] }
 0x181   :  { %2226 = vmatprep.subr.mxu0 %v1228_v9  ;;  %2261 = vmatprep.subr.mxu1 %v1228_v9  ;;  %v1619_v9 = vld [vmem:[%s3398_s3 + $0x740] sm:$0xff] }
 0x182   :  { %2227 = vmatpush3.msra.mxu0 %v1212_v10  ;;  %2262 = vmatpush3.msra.mxu1 %v1212_v10  ;;  %v1634_v10 = vld [vmem:[%s3398_s3 + $0x7b8] sm:$0xff] }
 0x183   :  { %2228 = vmatprep.subr.mxu0 %v1227_v11  ;;  %2263 = vmatprep.subr.mxu1 %v1227_v11  ;;  %v1618_v11 = vld [vmem:[%s3398_s3 + $0x738] sm:$0xff] }
 0x184   :  { %2229 = vmatpush3.msra.mxu0 %v1211_v12  ;;  %2264 = vmatpush3.msra.mxu1 %v1211_v12  ;;  %v1633_v12 = vld [vmem:[%s3398_s3 + $0x7b0] sm:$0xff] }
 0x185   :  { %1321 = vmatmul.mubr.f32.vlgmr.msra.gmra.mxu0 %v1249_v14  ;;  %1405 = vmatmul.mubr.f32.vlgmr.msra.gmra.mxu1 %v1333_v15  ;;  %v1632_v14 = vld [vmem:[%s3398_s3 + $0x7a8] sm:$0xff] }
 0x186   :  { %2268 = vmatprep.subr.mxu0 %v1442_v16  ;;  %2303 = vmatprep.subr.mxu1 %v1442_v16  ;;  %v1616_v15 = vld [vmem:[%s3398_s3 + $0x728] sm:$0xff]  ;;  %v1631_v16 = vld [vmem:[%s3398_s3 + $0x7a0] sm:$0xff] }
 0x187   :  { %2269 = vmatpush3.msra.mxu0 %v1426_v18  ;;  %1520 = vmatprep.mubr.f32.mxu0 %v1453_v19  ;;  %v1614_v19 = vld [vmem:[%s3398_s3 + $0x718] sm:$0xff] }
 0x188   :  { %2304 = vmatpush3.msra.mxu1 %v1426_v18  ;;  %1604 = vmatprep.mubr.f32.mxu1 %v1537_v20  ;;  %v1630_v18 = vld [vmem:[%s3398_s3 + $0x798] sm:$0xff]  ;;  %v1629_v20 = vld [vmem:[%s3398_s3 + $0x790] sm:$0xff] }
 0x189   :  { %2270 = vmatprep.subr.mxu0 %v1441_v21  ;;  %2305 = vmatprep.subr.mxu1 %v1441_v21  ;;  %v1613_v21 = vld [vmem:[%s3398_s3 + $0x710] sm:$0xff] }
 0x18a   :  { %2271 = vmatpush3.msra.mxu0 %v1425_v22  ;;  %2306 = vmatpush3.msra.mxu1 %v1425_v22  ;;  %v1628_v22 = vld [vmem:[%s3398_s3 + $0x788] sm:$0xff] }
 0x18b   :  { %2272 = vmatprep.subr.mxu0 %v1440_v23  ;;  %2307 = vmatprep.subr.mxu1 %v1440_v23  ;;  %v1612_v23 = vld [vmem:[%s3398_s3 + $0x708] sm:$0xff] }
 0x18c   :  { %2273 = vmatpush3.msra.mxu0 %v1424_v24  ;;  %2308 = vmatpush3.msra.mxu1 %v1424_v24  ;;  %v1627_v24 = vld [vmem:[%s3398_s3 + $0x780] sm:$0xff] }
 0x18d   :  { %2274 = vmatprep.subr.mxu0 %v1439_v25  ;;  %2309 = vmatprep.subr.mxu1 %v1439_v25  ;;  %v1611_v25 = vld [vmem:[%s3398_s3 + $0x700] sm:$0xff] }
 0x18e   :  { %2275 = vmatpush3.msra.mxu0 %v1423_v26  ;;  %2310 = vmatpush3.msra.mxu1 %v1423_v26  ;;  %v1649_v26 = vrot.slane %v3273_v51, %v2624_v4  ;;  %v211_v51 = vld [vmem:[%s3399_s4] sm:$0x1]  ;;  %s2440_s4 = smov [#allocation3]  }
 0x18f   :  { %2276 = vmatprep.subr.mxu0 %v1438_v27  ;;  %2311 = vmatprep.subr.mxu1 %v1438_v27  ;;  %v1733_v27 = vrot.slane %v3282_v55, %v2624_v4  ;;  %s1834_s10 = sshll.u32 %s2440_s4, 4  ;;  %s1835_s10 = int_to_ptr.vmem [resolvable:$true] %s1834_s10 }
 0x190   :  { %2277 = vmatpush3.msra.mxu0 %v1422_v28  ;;  %2312 = vmatpush3.msra.mxu1 %v1422_v28  ;;  %s2416_s11 = scalar_lea.vmem %s1835_s10, 32  ;;  %p2421_p1 = scmp.lt.s32.totalorder %s1835_s10, %s1835_s10 }
 0x191   :  { %2278 = vmatprep.subr.mxu0 %v1437_v29  ;;  %2313 = vmatprep.subr.mxu1 %v1437_v29  ;;  %p2417_p0 = scmp.ne.s32.totalorder %s1835_s10, %s2416_s11  ;;  %p2422_p2 = scmp.lt.s32.totalorder %s2416_s11, %s2416_s11 }
 0x192   :  { %2279 = vmatpush3.msra.mxu0 %v1421_v30  ;;  %2314 = vmatpush3.msra.mxu1 %v1421_v30 }
 0x193   :  { %2280 = vmatprep.subr.mxu0 %v1436_v31  ;;  %2315 = vmatprep.subr.mxu1 %v1436_v31  ;;  %p2423_p3 = por %p2422_p2, %p2421_p1 }
 0x194   :  { %2281 = vmatpush3.msra.mxu0 %v1420_v32  ;;  %2316 = vmatpush3.msra.mxu1 %v1420_v32 }
 0x195   :  { %2282 = vmatprep.subr.mxu0 %v1435_v33  ;;  %2317 = vmatprep.subr.mxu1 %v1435_v33  ;;  %p2424_p4 = pnand %p2423_p3, %p2417_p0 }
 0x196   :  { %2283 = vmatpush3.msra.mxu0 %v1419_v34  ;;  %2318 = vmatpush3.msra.mxu1 %v1419_v34 }
 0x197   :  { %2284 = vmatprep.subr.mxu0 %v1434_v35  ;;  %2319 = vmatprep.subr.mxu1 %v1434_v35 }
 0x198   :  { %2285 = vmatpush3.msra.mxu0 %v1418_v36  ;;  %2320 = vmatpush3.msra.mxu1 %v1418_v36 }
 0x199   :  { %2286 = vmatprep.subr.mxu0 %v1433_v37  ;;  %2321 = vmatprep.subr.mxu1 %v1433_v37 }
 0x19a   :  { %2287 = vmatpush3.msra.mxu0 %v1417_v38  ;;  %2322 = vmatpush3.msra.mxu1 %v1417_v38 }
 0x19b   :  { %2288 = vmatprep.subr.mxu0 %v1432_v39  ;;  %2323 = vmatprep.subr.mxu1 %v1432_v39 }
 0x19c   :  { %2289 = vmatpush3.msra.mxu0 %v1416_v40  ;;  %2324 = vmatpush3.msra.mxu1 %v1416_v40  ;;  %v1880_v28 = vpop.f32.mrf.mxu0  ;;  %v1915_v29 = vpop.f32.mrf.mxu1 }
 0x19d   :  { %2290 = vmatprep.subr.mxu0 %v1431_v41  ;;  %2325 = vmatprep.subr.mxu1 %v1431_v41 }
 0x19e   :  { %2291 = vmatpush3.msra.mxu0 %v1415_v42  ;;  %2326 = vmatpush3.msra.mxu1 %v1415_v42  ;;  %v1881_v30 = vpop.f32.mrf.mxu0  ;;  %v1916_v31 = vpop.f32.mrf.mxu1 }
 0x19f   :  { %2292 = vmatprep.subr.mxu0 %v1430_v43  ;;  %2327 = vmatprep.subr.mxu1 %v1430_v43 }
 0x1a0   :  { %2293 = vmatpush3.msra.mxu0 %v1414_v44  ;;  %2328 = vmatpush3.msra.mxu1 %v1414_v44 }
 0x1a1   :  { %2294 = vmatprep.subr.mxu0 %v1429_v45  ;;  %2329 = vmatprep.subr.mxu1 %v1429_v45 }
 0x1a2   :  { %2295 = vmatpush3.msra.mxu0 %v1413_v46  ;;  %2330 = vmatpush3.msra.mxu1 %v1413_v46 }
 0x1a3   :  { %2296 = vmatprep.subr.mxu0 %v1428_v47  ;;  %2331 = vmatprep.subr.mxu1 %v1428_v47 }
 0x1a4   :  { %2297 = vmatpush3.msra.mxu0 %v1412_v48  ;;  %2332 = vmatpush3.msra.mxu1 %v1412_v48 }
 0x1a5   :  { %2298 = vmatprep.subr.mxu0 %v1427_v49  ;;  %2333 = vmatprep.subr.mxu1 %v1427_v49  ;;  %v1882_v49 = vadd.f32 %v1881_v30, %v1880_v28 }
 0x1a6   :  { %2299 = vmatpush3.msra.mxu0 %v1411_v50  ;;  %2334 = vmatpush3.msra.mxu1 %v1411_v50  ;;  %v1917_v50 = vadd.f32 %v1916_v31, %v1915_v29 }
 0x1a7   :  { %1521 = vmatmul.mubr.f32.vlgmr.msra.gmra.mxu0 %v1449_v52  ;;  %1605 = vmatmul.mubr.f32.vlgmr.msra.gmra.mxu1 %v1533_v53 }
 0x1a8   :  { %2338 = vmatprep.subr.mxu0 %v1642_v54  ;;  %2373 = vmatprep.subr.mxu1 %v1642_v54 }
 0x1a9   :  { %2339 = vmatpush3.msra.mxu0 %v1626_v56  ;;  %1720 = vmatprep.mubr.f32.mxu0 %v1653_v57  ;;  %v410_v57 = vadd.f32 %v1917_v50, %v211_v51 }
 0x1aa   :  { %2374 = vmatpush3.msra.mxu1 %v1626_v56  ;;  %1804 = vmatprep.mubr.f32.mxu1 %v1737_v58  ;;  %v326_v56 = vadd.f32 %v1882_v49, %v211_v51 }
 0x1ab   :  { %2340 = vmatprep.subr.mxu0 %v1641_v59  ;;  %2375 = vmatprep.subr.mxu1 %v1641_v59 }
 0x1ac   :  { %2341 = vmatpush3.msra.mxu0 %v1625_v60  ;;  %2376 = vmatpush3.msra.mxu1 %v1625_v60 }
 0x1ad   :  { %2342 = vmatprep.subr.mxu0 %v1640_v61  ;;  %2377 = vmatprep.subr.mxu1 %v1640_v61 }
 0x1ae   :  { %2343 = vmatpush3.msra.mxu0 %v1624_v5  ;;  %2378 = vmatpush3.msra.mxu1 %v1624_v5 }
 0x1af   :  { %2344 = vmatprep.subr.mxu0 %v1639_v62  ;;  %2379 = vmatprep.subr.mxu1 %v1639_v62 }
 0x1b0   :  { %2345 = vmatpush3.msra.mxu0 %v1623_v63  ;;  %2380 = vmatpush3.msra.mxu1 %v1623_v63 }
 0x1b1   :  { %2346 = vmatprep.subr.mxu0 %v1638_v0  ;;  %2381 = vmatprep.subr.mxu1 %v1638_v0 }
 0x1b2   :  { %2347 = vmatpush3.msra.mxu0 %v1622_v1  ;;  %2382 = vmatpush3.msra.mxu1 %v1622_v1 }
 0x1b3   :  { %2348 = vmatprep.subr.mxu0 %v1637_v2  ;;  %2383 = vmatprep.subr.mxu1 %v1637_v2 }
 0x1b4   :  { %2349 = vmatpush3.msra.mxu0 %v1621_v3  ;;  %2384 = vmatpush3.msra.mxu1 %v1621_v3 }
 0x1b5   :  { %2350 = vmatprep.subr.mxu0 %v1636_v6  ;;  %2385 = vmatprep.subr.mxu1 %v1636_v6 }
 0x1b6   :  { %2351 = vmatpush3.msra.mxu0 %v1620_v7  ;;  %2386 = vmatpush3.msra.mxu1 %v1620_v7 }
 0x1b7   :  { %2352 = vmatprep.subr.mxu0 %v1635_v8  ;;  %2387 = vmatprep.subr.mxu1 %v1635_v8 }
 0x1b8   :  { %2353 = vmatpush3.msra.mxu0 %v1619_v9  ;;  %2388 = vmatpush3.msra.mxu1 %v1619_v9 }
 0x1b9   :  { %2354 = vmatprep.subr.mxu0 %v1634_v10  ;;  %2389 = vmatprep.subr.mxu1 %v1634_v10 }
 0x1ba   :  { %2355 = vmatpush3.msra.mxu0 %v1618_v11  ;;  %2390 = vmatpush3.msra.mxu1 %v1618_v11 }
 0x1bb   :  { %2356 = vmatprep.subr.mxu0 %v1633_v12  ;;  %2391 = vmatprep.subr.mxu1 %v1633_v12 }
 0x1bc   :  { %2357 = vmatpush3.msra.mxu0 %v1617_v13  ;;  %2392 = vmatpush3.msra.mxu1 %v1617_v13 }
 0x1bd   :  { %2358 = vmatprep.subr.mxu0 %v1632_v14  ;;  %2393 = vmatprep.subr.mxu1 %v1632_v14  ;;  %v1950_v32 = vpop.f32.mrf.mxu0  ;;  %v1985_v33 = vpop.f32.mrf.mxu1 }
 0x1be   :  { %2359 = vmatpush3.msra.mxu0 %v1616_v15  ;;  %2394 = vmatpush3.msra.mxu1 %v1616_v15 }
 0x1bf   :  { %2360 = vmatprep.subr.mxu0 %v1631_v16  ;;  %2395 = vmatprep.subr.mxu1 %v1631_v16  ;;  %v1951_v34 = vpop.f32.mrf.mxu0  ;;  %v1986_v35 = vpop.f32.mrf.mxu1 }
 0x1c0   :  { %2361 = vmatpush3.msra.mxu0 %v1615_v17  ;;  %2396 = vmatpush3.msra.mxu1 %v1615_v17  ;;  %v1952_v52 = vadd.f32 %v1951_v34, %v1950_v32  ;;  %v1987_v53 = vadd.f32 %v1986_v35, %v1985_v33 }
 0x1c1   :  { %2362 = vmatprep.subr.mxu0 %v1630_v18  ;;  %2397 = vmatprep.subr.mxu1 %v1630_v18 }
 0x1c2   :  { %2363 = vmatpush3.msra.mxu0 %v1614_v19  ;;  %2398 = vmatpush3.msra.mxu1 %v1614_v19  ;;  %v526_v5 = vadd.f32 %v1952_v52, %v326_v56  ;;  %v610_v62 = vadd.f32 %v1987_v53, %v410_v57 }
 0x1c3   :  { %2364 = vmatprep.subr.mxu0 %v1629_v20  ;;  %2399 = vmatprep.subr.mxu1 %v1629_v20 }
 0x1c4   :  { %2365 = vmatpush3.msra.mxu0 %v1613_v21  ;;  %2400 = vmatpush3.msra.mxu1 %v1613_v21 }
 0x1c5   :  { %2366 = vmatprep.subr.mxu0 %v1628_v22  ;;  %2401 = vmatprep.subr.mxu1 %v1628_v22 }
 0x1c6   :  { %2367 = vmatpush3.msra.mxu0 %v1612_v23  ;;  %2402 = vmatpush3.msra.mxu1 %v1612_v23 }
 0x1c7   :  { %2368 = vmatprep.subr.mxu0 %v1627_v24  ;;  %2403 = vmatprep.subr.mxu1 %v1627_v24 }
 0x1c8   :  { %2369 = vmatpush3.msra.mxu0 %v1611_v25  ;;  %2404 = vmatpush3.msra.mxu1 %v1611_v25 }
 0x1c9   :  { %1721 = vmatmul.mubr.f32.vlgmr.msra.gmra.mxu0 %v1649_v26  ;;  %1805 = vmatmul.mubr.f32.vlgmr.msra.gmra.mxu1 %v1733_v27 }
 0x1df   :  { %v2020_v36 = vpop.f32.mrf.mxu0  ;;  %v2055_v37 = vpop.f32.mrf.mxu1 }
 0x1e1   :  { %v2021_v38 = vpop.f32.mrf.mxu0  ;;  %v2056_v39 = vpop.f32.mrf.mxu1 }
 0x1e2   :  { %v2022_v58 = vadd.f32 %v2021_v38, %v2020_v36  ;;  %v2057_v59 = vadd.f32 %v2056_v39, %v2055_v37 }
 0x1e4   :  { %v726_v1 = vadd.f32 %v2022_v58, %v526_v5  ;;  %v810_v2 = vadd.f32 %v2057_v59, %v610_v62 }
 0x201   :  { %v2090_v40 = vpop.f32.mrf.mxu0  ;;  %v2125_v4 = vpop.f32.mrf.mxu1 }
 0x203   :  { %v2091_v41 = vpop.f32.mrf.mxu0  ;;  %v2126_v42 = vpop.f32.mrf.mxu1 }
 0x204   :  { %v2092_v63 = vadd.f32 %v2091_v41, %v2090_v40  ;;  %v2127_v0 = vadd.f32 %v2126_v42, %v2125_v4 }
 0x206   :  { %v926_v9 = vadd.f32 %v2092_v63, %v726_v1  ;;  %v1010_v10 = vadd.f32 %v2127_v0, %v810_v2 }
 0x223   :  { %v2160_v43 = vpop.f32.mrf.mxu0  ;;  %v2195_v44 = vpop.f32.mrf.mxu1 }
 0x225   :  { %v2161_v45 = vpop.f32.mrf.mxu0  ;;  %v2196_v46 = vpop.f32.mrf.mxu1 }
 0x226   :  { %v2162_v3 = vadd.f32 %v2161_v45, %v2160_v43  ;;  %v2197_v6 = vadd.f32 %v2196_v46, %v2195_v44 }
 0x228   :  { %v1126_v13 = vadd.f32 %v2162_v3, %v926_v9  ;;  %v1210_v14 = vadd.f32 %v2197_v6, %v1010_v10 }
 0x245   :  { %v2230_v47 = vpop.f32.mrf.mxu0  ;;  %v2265_v48 = vpop.f32.mrf.mxu1 }
 0x247   :  { %v2231_v54 = vpop.f32.mrf.mxu0  ;;  %v2266_v55 = vpop.f32.mrf.mxu1 }
 0x248   :  { %v2232_v11 = vadd.f32 %v2231_v54, %v2230_v47  ;;  %v2267_v12 = vadd.f32 %v2266_v55, %v2265_v48 }
 0x24a   :  { %v1326_v19 = vadd.f32 %v2232_v11, %v1126_v13  ;;  %v1410_v20 = vadd.f32 %v2267_v12, %v1210_v14 }
 0x267   :  { %v2300_v60 = vpop.f32.mrf.mxu0  ;;  %v2335_v61 = vpop.f32.mrf.mxu1 }
 0x269   :  { %v2301_v7 = vpop.f32.mrf.mxu0  ;;  %v2336_v8 = vpop.f32.mrf.mxu1 }
 0x26a   :  { %v2302_v15 = vadd.f32 %v2301_v7, %v2300_v60  ;;  %v2337_v16 = vadd.f32 %v2336_v8, %v2335_v61 }
 0x26c   :  { %v1526_v23 = vadd.f32 %v2302_v15, %v1326_v19  ;;  %v1610_v24 = vadd.f32 %v2337_v16, %v1410_v20 }
 0x289   :  { %v2370_v17 = vpop.f32.mrf.mxu0  ;;  %v2405_v18 = vpop.f32.mrf.mxu1 }
 0x28b   :  { %v2371_v21 = vpop.f32.mrf.mxu0  ;;  %v2406_v22 = vpop.f32.mrf.mxu1 }
 0x28c   :  { %v2372_v25 = vadd.f32 %v2371_v21, %v2370_v17  ;;  %v2407_v26 = vadd.f32 %v2406_v22, %v2405_v18 }
 0x28e   :  { %v1726_v27 = vadd.f32 %v2372_v25, %v1526_v23  ;;  %v1810_v28 = vadd.f32 %v2407_v26, %v1610_v24 }
 0x290   :  { %v1820_v29 = vmul.f32 %v1810_v28, %v1810_v28  ;;  %v1811_v30 = vmul.f32 %v1726_v27, %v1726_v27 }
 0x292   :  { %v1821_v31 = vsel %vm1812_vm2, %v1820_v29, 0.0  ;;  %v1813_v32 = vsel %vm1812_vm2, %v1811_v30, 0.0 }
 0x293   :  { %1822 = vadd.xlane.f32.xlu1 %v1821_v31  ;;  %1814 = vadd.xlane.f32.xlu0 %v1813_v32 }
 0x31c   :  { %v1823_v33 = vpop.xlane.xlu1 %1822  ;;  %v1815_v34 = vpop.xlane.xlu0 %1814 }
 0x31d   :  { %v1824_v35 = vmax.f32 %v1823_v33, 1e-24  ;;  %v1816_v36 = vmax.f32 %v1815_v34, 1e-24 }
 0x31f   :  { %2412 = vrsqrt.f32 %v1824_v35 }
 0x320   :  { %2414 = vrsqrt.f32 %v1816_v36 }
 0x32c   :  { %v2413_v37 = vpop.eup %2412 }
 0x32d   :  { %v2415_v38 = vpop.eup %2414  ;;  %v1826_v39 = vmul.f32 %v2413_v37, %v1810_v28 }
 0x32e   :  { %v1818_v40 = vmul.f32 %v2415_v38, %v1726_v27 }
 0x32f   :  { %1827 = vst.msk [vmem:[#allocation3 + $0x1] sm:$0x1] %vm1812_vm2, %v1826_v39 }
 0x330   :  { %1819 = vst.msk [vmem:[#allocation3] sm:$0x1] %vm1812_vm2, %v1818_v40 }
 0x331   :  { %2427 = shalt.err (!%p2424_p4)
}
 0x332   :  { %1837 = dma.vmem_to_hbm [thread:$0]  %s1835_s10, 32, %s3400_s5, [#allocation4]  }
 0x333   :  { %2436 = dma.done.wait [#allocation4], 32  }
 0x334   :  { %2437 = vsyncadd [#allocation4], 4294967264 }
 0x335   :  { %1841 = vsyncpa [#allocation4], 1 }

</bundles_post_ra>
